<compile_context>
chip_gen: v7x
topology: tpu7x:2x2x1
jax: 0.10.0
libtpu: 0.0.40
codegen_flags: <defaults>
</compile_context>

<pallas_src>
import numpy as np
import jax
import jax.numpy as jnp
from jax.experimental import pallas as pl
from jax.experimental.pallas import tpu as pltpu

SEQ_LEN = 2000   # fixed by the module: linear1 = nn.Linear(emb_size * 2000, hidden)


def logistic_kernel(x_ref, w1_ref, b1_ref, w2_ref, b2_ref, y_ref, bw_ref,
                    probs_ref, loss_ref):
    # linear1: (B, F) bf16 x (H, F) bf16 -> (B, H) f32 (MXU f32 accumulation).
    h = jax.lax.dot_general(
        x_ref[...], w1_ref[...],
        dimension_numbers=(((1,), (1,)), ((), ())),
        preferred_element_type=jnp.float32) + b1_ref[...]

    # linear2 (tiny) fully in f32: h (B, H) x w2 (O, H) -> (B, O) logits.
    logits = jax.lax.dot_general(
        h, w2_ref[...],
        dimension_numbers=(((1,), (1,)), ((), ())),
        preferred_element_type=jnp.float32) + b2_ref[...]

    p = jax.nn.sigmoid(logits)
    probs_ref[...] = p

    # Weighted BCE from logits (log_sigmoid runs on the EUP, avoids the 1-p cancellation);
    # F.binary_cross_entropy clamps log terms at -100.
    y = y_ref[...]
    w = bw_ref[...]
    log_p = jnp.maximum(jax.nn.log_sigmoid(logits), -100.0)
    log_1mp = jnp.maximum(jax.nn.log_sigmoid(-logits), -100.0)
    bce = -w * (y * log_p + (1.0 - y) * log_1mp)
    loss_ref[...] = jnp.broadcast_to(jnp.mean(bce), (1, 1))


@jax.jit
def logistic_forward(x_ids, emb_table_bf, w1_bf, b1, w2, b2, y_target, bce_weights):
    B = x_ids.shape[0]
    H, F = w1_bf.shape
    O = w2.shape[0]

    # Embedding lookup + flatten (torch .view); table is pre-cast bf16 so the gather
    # directly emits bf16 feats (no per-call convert op).
    feats = jnp.take(emb_table_bf, x_ids, axis=0).reshape(B, F)

    cost = pl.CostEstimate(
        flops=2 * B * F * H + 2 * B * H * O,
        transcendentals=4 * B * O,
        bytes_accessed=(B * F + H * F) * 2 + (B * O * 3 + O * H + H + O + 1) * 4)

    # Whole problem fits VMEM (~1.2 MiB of inputs), so: no grid, no K tiling, no
    # accumulator scratch -- each input is one full-array VMEM block.
    probs, loss = pl.pallas_call(
        logistic_kernel,
        out_shape=(jax.ShapeDtypeStruct((B, O), jnp.float32),
                   jax.ShapeDtypeStruct((1, 1), jnp.float32)),
        compiler_params=pltpu.CompilerParams(vmem_limit_bytes=16 * 1024 * 1024),
        cost_estimate=cost,
    )(feats, w1_bf, b1.reshape(1, -1), w2, b2.reshape(1, -1), y_target, bce_weights)
    return loss[0, 0], probs


def get_weights(y_target, output_size, seed=0):
    # Deterministic re-implementation of Logistic.getWeights (np.random.choice replaced
    # by a seeded generator; host-side glue, not kernel work).
    y = np.array(y_target)
    num_1 = y.sum(axis=1).astype(np.int64)
    weights = y.copy()
    rng = np.random.default_rng(seed)
    for i in range(y.shape[0]):
        idx = rng.choice(output_size, int(num_1[i]) * 200)
        weights[i, idx] = 1.0
    return jnp.asarray(weights, dtype=jnp.float32)


if __name__ == "__main__":
    vocab_size, emb_size, hidden_size, output_size = 50, 8, 32, 4
    batch = 2

    key = jax.random.PRNGKey(0)
    k_emb, k_w1, k_b1, k_w2, k_b2, k_x, k_y = jax.random.split(key, 7)

    # Deterministic params: nn.Embedding ~ N(0,1); nn.Linear ~ U(-1/sqrt(fan_in), 1/sqrt(fan_in)).
    # Weights kept in torch-native (out_features, in_features) layout.
    emb_table = jax.random.normal(k_emb, (vocab_size + 2, emb_size), jnp.float32)
    in1 = emb_size * SEQ_LEN
    lim1 = 1.0 / np.sqrt(in1)
    w1 = jax.random.uniform(k_w1, (hidden_size, in1), jnp.float32, -lim1, lim1)
    b1 = jax.random.uniform(k_b1, (hidden_size,), jnp.float32, -lim1, lim1)
    lim2 = 1.0 / np.sqrt(hidden_size)
    w2 = jax.random.uniform(k_w2, (output_size, hidden_size), jnp.float32, -lim2, lim2)
    b2 = jax.random.uniform(k_b2, (output_size,), jnp.float32, -lim2, lim2)

    # One-time bf16 casts at weight-prep time (NOT per forward call).
    emb_table_bf = emb_table.astype(jnp.bfloat16)
    w1_bf = w1.astype(jnp.bfloat16)

    x_ids = jax.random.randint(k_x, (batch, SEQ_LEN), 0, vocab_size + 2, jnp.int32)
    y_target = jax.random.bernoulli(k_y, 0.5, (batch, output_size)).astype(jnp.float32)
    bce_weights = get_weights(y_target, output_size)

    loss, probs = logistic_forward(x_ids, emb_table_bf, w1_bf, b1, w2, b2,
                                   y_target, bce_weights)
    jax.block_until_ready((loss, probs))
    # TODO(synk): full_evaluate (jaccard / precision / recall / F1 / AUC-ROC) is an
    # external numpy metrics helper not defined in the module; not ported.
    print("KERNEL_OK")
</pallas_src>

<mosaic_0001>
module attributes {stable_mosaic.version = 11 : i64} {
  func.func @logistic_kernel(%arg0: memref<2x16000xbf16, #tpu.memory_space<vmem>>, %arg1: memref<32x16000xbf16, #tpu.memory_space<vmem>>, %arg2: memref<1x32xf32, #tpu.memory_space<vmem>>, %arg3: memref<4x32xf32, #tpu.memory_space<vmem>>, %arg4: memref<1x4xf32, #tpu.memory_space<vmem>>, %arg5: memref<2x4xf32, #tpu.memory_space<vmem>>, %arg6: memref<2x4xf32, #tpu.memory_space<vmem>>, %arg7: memref<2x4xf32, #tpu.memory_space<vmem>>, %arg8: memref<1x1xf32, #tpu.memory_space<vmem>>) attributes {dimension_semantics = [], scalar_prefetch = 0 : i64, scratch_operands = 0 : i64, tpu.core_type = #tpu.core_type<tc>} {
    %c0 = arith.constant 0 : index
    %c0_0 = arith.constant 0 : index
    %0 = vector.load %arg0[%c0, %c0_0] : memref<2x16000xbf16, #tpu.memory_space<vmem>>, vector<2x16000xbf16>
    %c0_1 = arith.constant 0 : index
    %c0_2 = arith.constant 0 : index
    %1 = vector.load %arg1[%c0_1, %c0_2] : memref<32x16000xbf16, #tpu.memory_space<vmem>>, vector<32x16000xbf16>
    %cst = arith.constant dense<0.000000e+00> : vector<2x32xf32>
    %2 = tpu.matmul %0, %1, %cst {dimension_numbers = #tpu.dot_dimension_numbers<[1], [1], [0], [0], [0, 0, 1, 0], [], []>} : vector<2x16000xbf16>, vector<32x16000xbf16>, vector<2x32xf32> -> vector<2x32xf32>
    %c0_3 = arith.constant 0 : index
    %c0_4 = arith.constant 0 : index
    %3 = vector.load %arg2[%c0_3, %c0_4] : memref<1x32xf32, #tpu.memory_space<vmem>>, vector<1x32xf32>
    %4 = vector.broadcast %3 : vector<1x32xf32> to vector<2x32xf32>
    %5 = arith.addf %2, %4 : vector<2x32xf32>
    %c0_5 = arith.constant 0 : index
    %c0_6 = arith.constant 0 : index
    %6 = vector.load %arg3[%c0_5, %c0_6] : memref<4x32xf32, #tpu.memory_space<vmem>>, vector<4x32xf32>
    %cst_7 = arith.constant dense<0.000000e+00> : vector<2x4xf32>
    %7 = tpu.matmul %5, %6, %cst_7 {dimension_numbers = #tpu.dot_dimension_numbers<[1], [1], [0], [0], [0, 0, 1, 0], [], []>} : vector<2x32xf32>, vector<4x32xf32>, vector<2x4xf32> -> vector<2x4xf32>
    %c0_8 = arith.constant 0 : index
    %c0_9 = arith.constant 0 : index
    %8 = vector.load %arg4[%c0_8, %c0_9] : memref<1x4xf32, #tpu.memory_space<vmem>>, vector<1x4xf32>
    %9 = vector.broadcast %8 : vector<1x4xf32> to vector<2x4xf32>
    %10 = arith.addf %7, %9 : vector<2x4xf32>
    %11 = arith.negf %10 : vector<2x4xf32>
    %12 = math.exp %11 : vector<2x4xf32>
    %cst_10 = arith.constant 1.000000e+00 : f32
    %13 = vector.broadcast %cst_10 : f32 to vector<2x4xf32>
    %14 = arith.addf %13, %12 : vector<2x4xf32>
    %15 = arith.divf %13, %14 : vector<2x4xf32>
    %c0_11 = arith.constant 0 : index
    %c0_12 = arith.constant 0 : index
    %16 = vector.load %arg7[%c0_11, %c0_12] : memref<2x4xf32, #tpu.memory_space<vmem>>, vector<2x4xf32>
    tpu.vector_store %arg7[%c0_11, %c0_12], %15 {strides = array<i32>} : memref<2x4xf32, #tpu.memory_space<vmem>>, vector<2x4xf32>,
    %c0_13 = arith.constant 0 : index
    %c0_14 = arith.constant 0 : index
    %17 = vector.load %arg5[%c0_13, %c0_14] : memref<2x4xf32, #tpu.memory_space<vmem>>, vector<2x4xf32>
    %c0_15 = arith.constant 0 : index
    %c0_16 = arith.constant 0 : index
    %18 = vector.load %arg6[%c0_15, %c0_16] : memref<2x4xf32, #tpu.memory_space<vmem>>, vector<2x4xf32>
    %cst_17 = arith.constant 0.000000e+00 : f32
    %19 = vector.broadcast %cst_17 : f32 to vector<2x4xf32>
    %20 = arith.subf %19, %10 : vector<2x4xf32>
    %cst_18 = arith.constant 0.000000e+00 : f32
    %21 = vector.broadcast %cst_18 : f32 to vector<2x4xf32>
    %22 = arith.maximumf %20, %21 : vector<2x4xf32>
    %23 = vector.broadcast %cst_18 : f32 to vector<2x4xf32>
    %24 = arith.subf %20, %23 : vector<2x4xf32>
    %25 = arith.cmpf one, %24, %24 : vector<2x4xf32>
    %26 = vector.broadcast %cst_18 : f32 to vector<2x4xf32>
    %27 = arith.addf %20, %26 : vector<2x4xf32>
    %28 = math.absf %24 : vector<2x4xf32>
    %cst_19 = arith.constant 0.000000e+00 : f32
    %29 = vector.broadcast %cst_19 : f32 to vector<2x4xf32>
    %30 = arith.subf %29, %28 : vector<2x4xf32>
    %31 = math.exp %30 : vector<2x4xf32>
    %32 = math.log1p %31 : vector<2x4xf32>
    %33 = arith.addf %22, %32 : vector<2x4xf32>
    %34 = arith.select %25, %27, %33 : vector<2x4xi1>, vector<2x4xf32>
    %cst_20 = arith.constant 0.000000e+00 : f32
    %35 = vector.broadcast %cst_20 : f32 to vector<2x4xf32>
    %36 = arith.subf %35, %34 : vector<2x4xf32>
    %cst_21 = arith.constant -1.000000e+02 : f32
    %37 = vector.broadcast %cst_21 : f32 to vector<2x4xf32>
    %38 = arith.maximumf %36, %37 : vector<2x4xf32>
    %cst_22 = arith.constant 0.000000e+00 : f32
    %39 = vector.broadcast %cst_22 : f32 to vector<2x4xf32>
    %40 = arith.subf %39, %10 : vector<2x4xf32>
    %cst_23 = arith.constant 0.000000e+00 : f32
    %41 = vector.broadcast %cst_23 : f32 to vector<2x4xf32>
    %42 = arith.subf %41, %40 : vector<2x4xf32>
    %cst_24 = arith.constant 0.000000e+00 : f32
    %43 = vector.broadcast %cst_24 : f32 to vector<2x4xf32>
    %44 = arith.maximumf %42, %43 : vector<2x4xf32>
    %45 = vector.broadcast %cst_24 : f32 to vector<2x4xf32>
    %46 = arith.subf %42, %45 : vector<2x4xf32>
    %47 = arith.cmpf one, %46, %46 : vector<2x4xf32>
    %48 = vector.broadcast %cst_24 : f32 to vector<2x4xf32>
    %49 = arith.addf %42, %48 : vector<2x4xf32>
    %50 = math.absf %46 : vector<2x4xf32>
    %cst_25 = arith.constant 0.000000e+00 : f32
    %51 = vector.broadcast %cst_25 : f32 to vector<2x4xf32>
    %52 = arith.subf %51, %50 : vector<2x4xf32>
    %53 = math.exp %52 : vector<2x4xf32>
    %54 = math.log1p %53 : vector<2x4xf32>
    %55 = arith.addf %44, %54 : vector<2x4xf32>
    %56 = arith.select %47, %49, %55 : vector<2x4xi1>, vector<2x4xf32>
    %cst_26 = arith.constant 0.000000e+00 : f32
    %57 = vector.broadcast %cst_26 : f32 to vector<2x4xf32>
    %58 = arith.subf %57, %56 : vector<2x4xf32>
    %cst_27 = arith.constant -1.000000e+02 : f32
    %59 = vector.broadcast %cst_27 : f32 to vector<2x4xf32>
    %60 = arith.maximumf %58, %59 : vector<2x4xf32>
    %cst_28 = arith.constant 0.000000e+00 : f32
    %61 = vector.broadcast %cst_28 : f32 to vector<2x4xf32>
    %62 = arith.subf %61, %18 : vector<2x4xf32>
    %63 = arith.mulf %17, %38 : vector<2x4xf32>
    %cst_29 = arith.constant 1.000000e+00 : f32
    %64 = vector.broadcast %cst_29 : f32 to vector<2x4xf32>
    %65 = arith.subf %64, %17 : vector<2x4xf32>
    %66 = arith.mulf %65, %60 : vector<2x4xf32>
    %67 = arith.addf %63, %66 : vector<2x4xf32>
    %68 = arith.mulf %62, %67 : vector<2x4xf32>
    %69 = vector.shape_cast %68 : vector<2x4xf32> to vector<1x2x4xf32>
    %cst_30 = arith.constant dense<0.000000e+00> : vector<1xf32>
    %70 = vector.multi_reduction <add>, %69, %cst_30 [1, 2] : vector<1x2x4xf32> to vector<1xf32>
    %71 = vector.shape_cast %70 : vector<1xf32> to vector<1x1x1xf32>
    %72 = vector.extract %71[0, 0, 0] : f32 from vector<1x1x1xf32>
    %cst_31 = arith.constant 8.000000e+00 : f32
    %73 = arith.divf %72, %cst_31 : f32
    %74 = vector.broadcast %73 : f32 to vector<1x1xf32>
    %c0_32 = arith.constant 0 : index
    %c0_33 = arith.constant 0 : index
    %75 = vector.load %arg8[%c0_32, %c0_33] : memref<1x1xf32, #tpu.memory_space<vmem>>, vector<1x1xf32>
    tpu.vector_store %arg8[%c0_32, %c0_33], %74 {strides = array<i32>} : memref<1x1xf32, #tpu.memory_space<vmem>>, vector<1x1xf32>,
    return
  }
}

</mosaic_0001>

<bundles_post_ra>
// kernel: logistic_forward.1
= control target key start
LH: loop header
LB: loop body
LE: loop exit
PB: predicated region body
PF: predicated region fallthrough
CT: control target
= control target key end

     0   :  { %14 = vsyncpa [#allocation3], 0  ;;  %v326_v1 = vlaneseq  ;;  %v6158_v3 = vmov 1966171168   ;;  %s7166_s0 = inlined_call_operand.vmem [shape: bf16[2,16000], index: 0, kind: input, shape index: {}]   ;;  %s7167_s1 = inlined_call_operand.vmem [shape: bf16[32,16000], index: 1, kind: input, shape index: {}]   ;;  %s7168_s2 = inlined_call_operand.vmem [shape: f32[1,32], index: 2, kind: input, shape index: {}]   ;;  %s7169_s3 = inlined_call_operand.vmem [shape: f32[4,32], index: 3, kind: input, shape index: {}]   ;;  %s7170_s4 = inlined_call_operand.vmem [shape: f32[1,4], index: 4, kind: input, shape index: {}]   ;;  %s7171_s5 = inlined_call_operand.vmem [shape: f32[2,4], index: 5, kind: input, shape index: {}]   ;;  %s7172_s6 = inlined_call_operand.vmem [shape: f32[2,4], index: 6, kind: input, shape index: {}]   ;;  %s7173_s7 = inlined_call_operand.hbm [shape: f32[2,4], index: 7, kind: output, shape index: {0}]   ;;  %s7174_s8 = inlined_call_operand.hbm [shape: f32[1,1], index: 8, kind: output, shape index: {1}]  }
   0x1   :  { %v5706_v0 = vld [vmem:[%s7167_s1 + $0x4] ss:$500 sps:$4 sm:$0xff]   ;;  %v5708_v2 = vld [vmem:[%s7167_s1 + $0xfc] ss:$500 sps:$4 sm:$0xff]   ;;  %v324_v4 = vunpack.c.l.s4 %v6158_v3  ;;  %v5710_v5 = vld [vmem:[%s7167_s1] ss:$500 sps:$4 sm:$0xff]  }
   0x2   :  { %2473 = vmatprep.subr.bf16.mxu1 %v5706_v0  ;;  %v5711_v6 = vld [vmem:[%s7167_s1 + $0xf8] ss:$500 sps:$4 sm:$0xff]   ;;  %v327_v7 = vshrl.u32 %v326_v1, 7  ;;  %3713 = vmatprep.subr.bf16.mxu0 %v5708_v2  ;;  %v31_v11 = vld [vmem:[%s7166_s0] sm:$0xff]  ;;  %v5716_v15 = vld [vmem:[%s7167_s1 + $0x3e8] ss:$500 sps:$4 sm:$0xff]  }
   0x3   :  { %v5712_v8 = vld [vmem:[%s7167_s1 + $0x3ec] ss:$500 sps:$4 sm:$0xff]   ;;  %v325_v9 = vunpack.c.0.s8 %v324_v4  ;;  %2474 = vmatpush1.bf16.xpose.msra.mxu1 %v5710_v5  ;;  %3714 = vmatpush1.bf16.xpose.msra.mxu0 %v5711_v6  ;;  %v5714_v10 = vld [vmem:[%s7167_s1 + $0x4e4] ss:$500 sps:$4 sm:$0xff]   ;;  %v5719_v28 = vld [vmem:[%s7167_s1 + $0x8] ss:$500 sps:$4 sm:$0xff]   ;;  %v322_v38 = vcombine.high %v31_v11, %v31_v11 }
   0x4   :  { %2475 = vmatprep.subr.bf16.mxu1 %v5712_v8  ;;  %3715 = vmatprep.subr.bf16.mxu0 %v5714_v10  ;;  %v38_v14 = vld [vmem:[%s7166_s0 + $0x38] sm:$0xff]  ;;  %v5717_v16 = vld [vmem:[%s7167_s1 + $0x4e0] ss:$500 sps:$4 sm:$0xff]   ;;  %v5726_v39 = vld [vmem:[%s7167_s1 + $0x3f0] ss:$500 sps:$4 sm:$0xff]  }
   0x5   :  { %v6229_v12 = vsub.s32 %v325_v9, %v327_v7  ;;  %v665_v17 = vcombine.high %v38_v14, %v38_v14  ;;  %v5721_v19 = vld [vmem:[%s7167_s1 + $0xc] ss:$500 sps:$4 sm:$0xff]   ;;  %v5725_v21 = vld [vmem:[%s7167_s1 + $0x104] ss:$500 sps:$4 sm:$0xff]   ;;  %v5728_v34 = vld [vmem:[%s7167_s1 + $0x3f4] ss:$500 sps:$4 sm:$0xff]  }
   0x6   :  { %v39_v25 = vld [vmem:[%s7166_s0 + $0x40] sm:$0xff]  ;;  %v5729_v40 = vld [vmem:[%s7167_s1 + $0x4e8] ss:$500 sps:$4 sm:$0xff]   ;;  %v5738_v54 = vld [vmem:[%s7167_s1 + $0x3f8] ss:$500 sps:$4 sm:$0xff]  }
   0x7   :  { %v329_v13 = vrot.slane %v31_v11, %v6229_v12  ;;  %v679_v20 = vrot.slane %v665_v17, %v6229_v12  ;;  %v721_v26 = vrot.slane %v39_v25, %v6229_v12  ;;  %v5723_v33 = vld [vmem:[%s7167_s1 + $0x100] ss:$500 sps:$4 sm:$0xff]   ;;  %v336_v43 = vrot.slane %v322_v38, %v6229_v12  ;;  %v5732_v46 = vld [vmem:[%s7167_s1 + $0x10] ss:$500 sps:$4 sm:$0xff]   ;;  %v5735_v47 = vld [vmem:[%s7167_s1 + $0x108] ss:$500 sps:$4 sm:$0xff]  }
   0x8   :  { %v5731_v35 = vld [vmem:[%s7167_s1 + $0x4ec] ss:$500 sps:$4 sm:$0xff]   ;;  %v5734_v41 = vld [vmem:[%s7167_s1 + $0x14] ss:$500 sps:$4 sm:$0xff]   ;;  %v5740_v49 = vld [vmem:[%s7167_s1 + $0x3fc] ss:$500 sps:$4 sm:$0xff]   ;;  %v714_v53 = vcombine.high %v39_v25, %v39_v25 }
   0x9   :  { %v337_v18 = vcombine.high %v329_v13, %v329_v13  ;;  %v681_v23 = vcombine.high %v679_v20, %v679_v20  ;;  %v6250_v24 = vrot.slane %v679_v20, %v6229_v12  ;;  %v345_v29 = vrot.slane %v329_v13, %v6229_v12  ;;  %v5737_v42 = vld [vmem:[%s7167_s1 + $0x10c] ss:$500 sps:$4 sm:$0xff]   ;;  %v5743_v50 = vld [vmem:[%s7167_s1 + $0x4f4] ss:$500 sps:$4 sm:$0xff]   ;;  %v5741_v55 = vld [vmem:[%s7167_s1 + $0x4f0] ss:$500 sps:$4 sm:$0xff]  }
   0xa   :  { %v729_v31 = vcombine.high %v721_v26, %v721_v26  ;;  %v338_v44 = vcombine.high %v336_v43, %v336_v43  ;;  %v737_v48 = vrot.slane %v721_v26, %v6229_v12  ;;  %v5746_v56 = vld [vmem:[%s7167_s1 + $0x1c] ss:$500 sps:$4 sm:$0xff]   ;;  %v5749_v57 = vld [vmem:[%s7167_s1 + $0x114] ss:$500 sps:$4 sm:$0xff]   ;;  %v728_v58 = vrot.slane %v714_v53, %v6229_v12  ;;  %v5744_v60 = vld [vmem:[%s7167_s1 + $0x18] ss:$500 sps:$4 sm:$0xff]  }
   0xb   :  { %v359_v22 = vrot.slane %v337_v18, %v6229_v12  ;;  %2476 = vmatpush1.bf16.xpose.msra.mxu1 %v5716_v15  ;;  %3716 = vmatpush1.bf16.xpose.msra.mxu0 %v5717_v16  ;;  %v6257_v27 = vrot.slane %v681_v23, %v6229_v12  ;;  %v711_v30 = vcombine.high %v6250_v24, %v6250_v24  ;;  %v5747_v63 = vld [vmem:[%s7167_s1 + $0x110] ss:$500 sps:$4 sm:$0xff]   ;;  %v32_v4 = vld [vmem:[%s7166_s0 + $0x8] sm:$0xff]  ;;  %v5750_v5 = vld [vmem:[%s7167_s1 + $0x400] ss:$500 sps:$4 sm:$0xff]  }
   0xc   :  { %2513 = vmatprep.subr.bf16.mxu1 %v5721_v19  ;;  %3753 = vmatprep.subr.bf16.mxu0 %v5725_v21  ;;  %v751_v37 = vrot.slane %v729_v31, %v6229_v12  ;;  %v367_v45 = vcombine.high %v345_v29, %v345_v29  ;;  %v366_v51 = vrot.slane %v338_v44, %v6229_v12  ;;  %v5752_v0 = vld [vmem:[%s7167_s1 + $0x404] ss:$500 sps:$4 sm:$0xff]   ;;  %v5755_v1 = vld [vmem:[%s7167_s1 + $0x4fc] ss:$500 sps:$4 sm:$0xff]   ;;  %v5756_v11 = vld [vmem:[%s7167_s1 + $0x20] ss:$500 sps:$4 sm:$0xff]  }
   0xd   :  { %2505 = vmatprep.mubr.bf16.mxu1 %v359_v22  ;;  %v713_v32 = vcombine.high %v6257_v27, %v6257_v27  ;;  %v369_v36 = vcombine.high %v359_v22, %v359_v22  ;;  %v730_v59 = vcombine.high %v728_v58, %v728_v58  ;;  %v352_v61 = vrot.slane %v336_v43, %v6229_v12  ;;  %v5753_v6 = vld [vmem:[%s7167_s1 + $0x4f8] ss:$500 sps:$4 sm:$0xff]   ;;  %v5762_v8 = vld [vmem:[%s7167_s1 + $0x11c] ss:$500 sps:$4 sm:$0xff]   ;;  %v5766_v21 = vld [vmem:[%s7167_s1 + $0x500] ss:$500 sps:$4 sm:$0xff]  }
   0xe   :  { %v761_v52 = vcombine.high %v751_v37, %v751_v37  ;;  %v759_v62 = vcombine.high %v737_v48, %v737_v48  ;;  %v370_v2 = vcombine.high %v366_v51, %v366_v51  ;;  %v5758_v7 = vld [vmem:[%s7167_s1 + $0x24] ss:$500 sps:$4 sm:$0xff]   ;;  %v378_v9 = vrot.slane %v32_v4, %v6229_v12  ;;  %v5765_v16 = vld [vmem:[%s7167_s1 + $0x40c] ss:$500 sps:$4 sm:$0xff]   ;;  %v5763_v20 = vld [vmem:[%s7167_s1 + $0x408] ss:$500 sps:$4 sm:$0xff]  }
   0xf   :  { %3745 = vmatprep.mubr.bf16.mxu0 %v713_v32  ;;  %v758_v3 = vrot.slane %v730_v59, %v6229_v12  ;;  %v368_v13 = vcombine.high %v352_v61, %v352_v61  ;;  %v744_v14 = vrot.slane %v728_v58, %v6229_v12  ;;  %v5760_v15 = vld [vmem:[%s7167_s1 + $0x118] ss:$500 sps:$4 sm:$0xff]   ;;  %v5778_v38 = vld [vmem:[%s7167_s1 + $0x508] ss:$500 sps:$4 sm:$0xff]   ;;  %v5781_v43 = vld [vmem:[%s7167_s1 + $0x30] ss:$500 sps:$4 sm:$0xff]  }
  0x10   :  { %v386_v10 = vcombine.high %v378_v9, %v378_v9  ;;  %v5768_v17 = vld [vmem:[%s7167_s1 + $0x504] ss:$500 sps:$4 sm:$0xff]   ;;  %v5771_v22 = vld [vmem:[%s7167_s1 + $0x2c] ss:$500 sps:$4 sm:$0xff]   ;;  %v394_v31 = vrot.slane %v378_v9, %v6229_v12  ;;  %v5784_v44 = vld [vmem:[%s7167_s1 + $0x128] ss:$500 sps:$4 sm:$0xff]  }
  0x11   :  { %v762_v19 = vcombine.high %v758_v3, %v758_v3  ;;  %v5774_v23 = vld [vmem:[%s7167_s1 + $0x124] ss:$500 sps:$4 sm:$0xff]   ;;  %v40_v25 = vld [vmem:[%s7166_s0 + $0x48] sm:$0xff]  ;;  %v760_v32 = vcombine.high %v744_v14, %v744_v14  ;;  %v5806_v9 = vld [vmem:[%s7167_s1 + $0x40] ss:$500 sps:$4 sm:$0xff]  }
  0x12   :  { %2506 = vmatmul.mubr.bf16.vlgmr.msra.gmra.mrb[0].mxu1 %v345_v29  ;;  %3746 = vmatmul.mubr.bf16.vlgmr.msra.gmra.mrb[0].mxu0 %v711_v30  ;;  %v408_v18 = vrot.slane %v386_v10, %v6229_v12  ;;  %v770_v26 = vrot.slane %v40_v25, %v6229_v12  ;;  %v5772_v29 = vld [vmem:[%s7167_s1 + $0x120] ss:$500 sps:$4 sm:$0xff]   ;;  %v5790_v53 = vld [vmem:[%s7167_s1 + $0x510] ss:$500 sps:$4 sm:$0xff]   ;;  %v5794_v58 = vld [vmem:[%s7167_s1 + $0x38] ss:$500 sps:$4 sm:$0xff]  }
  0x13   :  { %2514 = vmatpush1.bf16.xpose.msra.mxu1 %v5719_v28  ;;  %3754 = vmatpush1.bf16.xpose.msra.mxu0 %v5723_v33  ;;  %v5769_v28 = vld [vmem:[%s7167_s1 + $0x28] ss:$500 sps:$4 sm:$0xff]   ;;  %v5797_v59 = vld [vmem:[%s7167_s1 + $0x130] ss:$500 sps:$4 sm:$0xff]   ;;  %v5810_v10 = vld [vmem:[%s7167_s1 + $0x138] ss:$500 sps:$4 sm:$0xff]  }
  0x14   :  { %2515 = vmatprep.subr.bf16.mxu1 %v5728_v34  ;;  %3755 = vmatprep.subr.bf16.mxu0 %v5731_v35  ;;  %v778_v30 = vcombine.high %v770_v26, %v770_v26  ;;  %v5777_v33 = vld [vmem:[%s7167_s1 + $0x414] ss:$500 sps:$4 sm:$0xff]   ;;  %v5780_v34 = vld [vmem:[%s7167_s1 + $0x50c] ss:$500 sps:$4 sm:$0xff]   ;;  %v418_v35 = vcombine.high %v408_v18, %v408_v18 }
  0x15   :  { %2545 = vmatprep.mubr.bf16.mxu1 %v369_v36  ;;  %3785 = vmatprep.mubr.bf16.mxu0 %v751_v37  ;;  %v5775_v37 = vld [vmem:[%s7167_s1 + $0x410] ss:$500 sps:$4 sm:$0xff]  }
  0x16   :  { %v800_v36 = vrot.slane %v778_v30, %v6229_v12 }
  0x1b   :  { %2516 = vmatpush1.bf16.xpose.msra.mxu1 %v5726_v39  ;;  %3756 = vmatpush1.bf16.xpose.msra.mxu0 %v5729_v40  ;;  %v371_v39 = vcombine.high %v32_v4, %v32_v4  ;;  %v5783_v40 = vld [vmem:[%s7167_s1 + $0x34] ss:$500 sps:$4 sm:$0xff]  }
  0x1c   :  { %2553 = vmatprep.subr.bf16.mxu1 %v5734_v41  ;;  %3793 = vmatprep.subr.bf16.mxu0 %v5737_v42  ;;  %v5786_v41 = vld [vmem:[%s7167_s1 + $0x12c] ss:$500 sps:$4 sm:$0xff]  }
  0x1d   :  { %v385_v42 = vrot.slane %v371_v39, %v6229_v12  ;;  %v5800_v4 = vld [vmem:[%s7167_s1 + $0x420] ss:$500 sps:$4 sm:$0xff]  }
  0x22   :  { %2546 = vmatmul.mubr.bf16.vlgmr.msra.gmra.mrb[0].mxu1 %v367_v45  ;;  %3786 = vmatmul.mubr.bf16.vlgmr.msra.gmra.mrb[0].mxu0 %v737_v48  ;;  %v387_v45 = vcombine.high %v385_v42, %v385_v42  ;;  %v5789_v48 = vld [vmem:[%s7167_s1 + $0x41c] ss:$500 sps:$4 sm:$0xff]  }
  0x23   :  { %2554 = vmatpush1.bf16.xpose.msra.mxu1 %v5732_v46  ;;  %3794 = vmatpush1.bf16.xpose.msra.mxu0 %v5735_v47  ;;  %v416_v46 = vcombine.high %v394_v31, %v394_v31  ;;  %v786_v47 = vrot.slane %v770_v26, %v6229_v12 }
  0x24   :  { %2555 = vmatprep.subr.bf16.mxu1 %v5740_v49  ;;  %3795 = vmatprep.subr.bf16.mxu0 %v5743_v50  ;;  %v5792_v49 = vld [vmem:[%s7167_s1 + $0x514] ss:$500 sps:$4 sm:$0xff]   ;;  %v415_v50 = vrot.slane %v387_v45, %v6229_v12 }
  0x25   :  { %2585 = vmatprep.mubr.bf16.mxu1 %v366_v51  ;;  %3825 = vmatprep.mubr.bf16.mxu0 %v761_v52  ;;  %v810_v51 = vcombine.high %v800_v36, %v800_v36  ;;  %v5787_v52 = vld [vmem:[%s7167_s1 + $0x418] ss:$500 sps:$4 sm:$0xff]  }
  0x2b   :  { %2556 = vmatpush1.bf16.xpose.msra.mxu1 %v5738_v54  ;;  %3796 = vmatpush1.bf16.xpose.msra.mxu0 %v5741_v55  ;;  %v763_v54 = vcombine.high %v40_v25, %v40_v25  ;;  %v5796_v55 = vld [vmem:[%s7167_s1 + $0x3c] ss:$500 sps:$4 sm:$0xff]  }
  0x2c   :  { %2593 = vmatprep.subr.bf16.mxu1 %v5746_v56  ;;  %3833 = vmatprep.subr.bf16.mxu0 %v5749_v57  ;;  %v5799_v56 = vld [vmem:[%s7167_s1 + $0x134] ss:$500 sps:$4 sm:$0xff]  }
  0x2d   :  { %v777_v57 = vrot.slane %v763_v54, %v6229_v12 }
  0x32   :  { %2586 = vmatmul.mubr.bf16.vlgmr.msra.gmra.mrb[0].mxu1 %v352_v61  ;;  %3826 = vmatmul.mubr.bf16.vlgmr.msra.gmra.mrb[0].mxu0 %v759_v62  ;;  %v401_v61 = vrot.slane %v385_v42, %v6229_v12  ;;  %v808_v62 = vcombine.high %v786_v47, %v786_v47 }
  0x33   :  { %2594 = vmatpush1.bf16.xpose.msra.mxu1 %v5744_v60  ;;  %3834 = vmatpush1.bf16.xpose.msra.mxu0 %v5747_v63  ;;  %v779_v60 = vcombine.high %v777_v57, %v777_v57  ;;  %v5802_v63 = vld [vmem:[%s7167_s1 + $0x424] ss:$500 sps:$4 sm:$0xff]  }
  0x34   :  { %2595 = vmatprep.subr.bf16.mxu1 %v5752_v0  ;;  %3835 = vmatprep.subr.bf16.mxu0 %v5755_v1  ;;  %v5805_v0 = vld [vmem:[%s7167_s1 + $0x51c] ss:$500 sps:$4 sm:$0xff]   ;;  %v419_v1 = vcombine.high %v415_v50, %v415_v50 }
  0x35   :  { %2625 = vmatprep.mubr.bf16.mxu1 %v370_v2  ;;  %3865 = vmatprep.mubr.bf16.mxu0 %v758_v3  ;;  %v807_v2 = vrot.slane %v779_v60, %v6229_v12  ;;  %v6448_v3 = vld [vmem:[%s7166_s0 + $0x10] sm:$0xff] }
  0x3b   :  { %2596 = vmatpush1.bf16.xpose.msra.mxu1 %v5750_v5  ;;  %3836 = vmatpush1.bf16.xpose.msra.mxu0 %v5753_v6  ;;  %v5803_v5 = vld [vmem:[%s7167_s1 + $0x518] ss:$500 sps:$4 sm:$0xff]  }
  0x3c   :  { %2633 = vmatprep.subr.bf16.mxu1 %v5758_v7  ;;  %3873 = vmatprep.subr.bf16.mxu0 %v5762_v8  ;;  %v5808_v6 = vld [vmem:[%s7167_s1 + $0x44] ss:$500 sps:$4 sm:$0xff]   ;;  %v5812_v7 = vld [vmem:[%s7167_s1 + $0x13c] ss:$500 sps:$4 sm:$0xff]   ;;  %v427_v8 = vrot.slane %v6448_v3, %v6229_v12 }
  0x42   :  { %2626 = vmatmul.mubr.bf16.vlgmr.msra.gmra.mrb[0].mxu1 %v368_v13  ;;  %3866 = vmatmul.mubr.bf16.vlgmr.msra.gmra.mrb[0].mxu0 %v744_v14  ;;  %v417_v13 = vcombine.high %v401_v61, %v401_v61  ;;  %v793_v14 = vrot.slane %v777_v57, %v6229_v12 }
  0x43   :  { %2634 = vmatpush1.bf16.xpose.msra.mxu1 %v5756_v11  ;;  %3874 = vmatpush1.bf16.xpose.msra.mxu0 %v5760_v15  ;;  %v435_v11 = vcombine.high %v427_v8, %v427_v8  ;;  %v5815_v15 = vld [vmem:[%s7167_s1 + $0x42c] ss:$500 sps:$4 sm:$0xff]  }
  0x44   :  { %2635 = vmatprep.subr.bf16.mxu1 %v5765_v16  ;;  %3875 = vmatprep.subr.bf16.mxu0 %v5768_v17  ;;  %v5818_v16 = vld [vmem:[%s7167_s1 + $0x524] ss:$500 sps:$4 sm:$0xff]  }
  0x45   :  { %2665 = vmatprep.mubr.bf16.mxu1 %v408_v18  ;;  %3905 = vmatprep.mubr.bf16.mxu0 %v762_v19  ;;  %v457_v17 = vrot.slane %v435_v11, %v6229_v12  ;;  %v811_v18 = vcombine.high %v807_v2, %v807_v2 }
  0x4b   :  { %2636 = vmatpush1.bf16.xpose.msra.mxu1 %v5763_v20  ;;  %3876 = vmatpush1.bf16.xpose.msra.mxu0 %v5766_v21 }
  0x4c   :  { %2673 = vmatprep.subr.bf16.mxu1 %v5771_v22  ;;  %3913 = vmatprep.subr.bf16.mxu0 %v5774_v23 }
  0x52   :  { %2666 = vmatmul.mubr.bf16.vlgmr.msra.gmra.mrb[0].mxu1 %v394_v31  ;;  %3906 = vmatmul.mubr.bf16.vlgmr.msra.gmra.mrb[0].mxu0 %v760_v32 }
  0x53   :  { %2674 = vmatpush1.bf16.xpose.msra.mxu1 %v5769_v28  ;;  %3914 = vmatpush1.bf16.xpose.msra.mxu0 %v5772_v29 }
  0x54   :  { %2675 = vmatprep.subr.bf16.mxu1 %v5777_v33  ;;  %3915 = vmatprep.subr.bf16.mxu0 %v5780_v34 }
  0x55   :  { %2705 = vmatprep.mubr.bf16.mxu1 %v418_v35  ;;  %3945 = vmatprep.mubr.bf16.mxu0 %v800_v36 }
  0x5b   :  { %2676 = vmatpush1.bf16.xpose.msra.mxu1 %v5775_v37  ;;  %3916 = vmatpush1.bf16.xpose.msra.mxu0 %v5778_v38 }
  0x5c   :  { %2713 = vmatprep.subr.bf16.mxu1 %v5783_v40  ;;  %3953 = vmatprep.subr.bf16.mxu0 %v5786_v41 }
  0x62   :  { %2706 = vmatmul.mubr.bf16.vlgmr.msra.gmra.mrb[0].mxu1 %v416_v46  ;;  %3946 = vmatmul.mubr.bf16.vlgmr.msra.gmra.mrb[0].mxu0 %v786_v47 }
  0x63   :  { %2714 = vmatpush1.bf16.xpose.msra.mxu1 %v5781_v43  ;;  %3954 = vmatpush1.bf16.xpose.msra.mxu0 %v5784_v44 }
  0x64   :  { %2715 = vmatprep.subr.bf16.mxu1 %v5789_v48  ;;  %3955 = vmatprep.subr.bf16.mxu0 %v5792_v49 }
  0x65   :  { %2745 = vmatprep.mubr.bf16.mxu1 %v415_v50  ;;  %3985 = vmatprep.mubr.bf16.mxu0 %v810_v51 }
  0x6b   :  { %2716 = vmatpush1.bf16.xpose.msra.mxu1 %v5787_v52  ;;  %3956 = vmatpush1.bf16.xpose.msra.mxu0 %v5790_v53 }
  0x6c   :  { %2753 = vmatprep.subr.bf16.mxu1 %v5796_v55  ;;  %3993 = vmatprep.subr.bf16.mxu0 %v5799_v56 }
  0x72   :  { %2746 = vmatmul.mubr.bf16.vlgmr.msra.gmra.mrb[0].mxu1 %v401_v61  ;;  %3986 = vmatmul.mubr.bf16.vlgmr.msra.gmra.mrb[0].mxu0 %v808_v62 }
  0x73   :  { %2754 = vmatpush1.bf16.xpose.msra.mxu1 %v5794_v58  ;;  %3994 = vmatpush1.bf16.xpose.msra.mxu0 %v5797_v59 }
  0x74   :  { %2755 = vmatprep.subr.bf16.mxu1 %v5802_v63  ;;  %3995 = vmatprep.subr.bf16.mxu0 %v5805_v0 }
  0x75   :  { %2785 = vmatprep.mubr.bf16.mxu1 %v419_v1  ;;  %4025 = vmatprep.mubr.bf16.mxu0 %v807_v2 }
  0x7b   :  { %2756 = vmatpush1.bf16.xpose.msra.mxu1 %v5800_v4  ;;  %3996 = vmatpush1.bf16.xpose.msra.mxu0 %v5803_v5 }
  0x7c   :  { %2793 = vmatprep.subr.bf16.mxu1 %v5808_v6  ;;  %4033 = vmatprep.subr.bf16.mxu0 %v5812_v7 }
  0x82   :  { %2786 = vmatmul.mubr.bf16.vlgmr.msra.gmra.mrb[0].mxu1 %v417_v13  ;;  %4026 = vmatmul.mubr.bf16.vlgmr.msra.gmra.mrb[0].mxu0 %v793_v14 }
  0x83   :  { %15 = vsyncpa [#allocation5], 0  ;;  %2794 = vmatpush1.bf16.xpose.msra.mxu1 %v5806_v9  ;;  %4034 = vmatpush1.bf16.xpose.msra.mxu0 %v5810_v10  ;;  %v41_v19 = vld [vmem:[%s7166_s0 + $0x50] sm:$0xff]  ;;  %v5813_v20 = vld [vmem:[%s7167_s1 + $0x428] ss:$500 sps:$4 sm:$0xff]   ;;  %v443_v28 = vrot.slane %v427_v8, %v6229_v12  ;;  %v809_v29 = vcombine.high %v793_v14, %v793_v14  ;;  %v467_v34 = vcombine.high %v457_v17, %v457_v17  ;;  %vm6160_vm0 = vmmov 0  }
  0x84   :  { %2795 = vmatprep.subr.bf16.mxu1 %v5815_v15  ;;  %4035 = vmatprep.subr.bf16.mxu0 %v5818_v16  ;;  %v5816_v21 = vld [vmem:[%s7167_s1 + $0x520] ss:$500 sps:$4 sm:$0xff]   ;;  %v5824_v23 = vld [vmem:[%s7167_s1 + $0x144] ss:$500 sps:$4 sm:$0xff]   ;;  %v819_v25 = vrot.slane %v41_v19, %v6229_v12  ;;  %v5819_v30 = vld [vmem:[%s7167_s1 + $0x48] ss:$500 sps:$4 sm:$0xff]   ;;  %v420_v36 = vcombine.high %v6448_v3, %v6448_v3  ;;  %v812_v51 = vcombine.high %v41_v19, %v41_v19 }
  0x85   :  { %2825 = vmatprep.mubr.bf16.mxu1 %v457_v17  ;;  %4065 = vmatprep.mubr.bf16.mxu0 %v811_v18  ;;  %v5821_v22 = vld [vmem:[%s7167_s1 + $0x4c] ss:$500 sps:$4 sm:$0xff]   ;;  %v5827_v32 = vld [vmem:[%s7167_s1 + $0x434] ss:$500 sps:$4 sm:$0xff]   ;;  %v5825_v37 = vld [vmem:[%s7167_s1 + $0x430] ss:$500 sps:$4 sm:$0xff]   ;;  %v465_v43 = vcombine.high %v443_v28, %v443_v28 }
  0x86   :  { %v827_v26 = vcombine.high %v819_v25, %v819_v25  ;;  %v5822_v31 = vld [vmem:[%s7167_s1 + $0x140] ss:$500 sps:$4 sm:$0xff]   ;;  %v5828_v38 = vld [vmem:[%s7167_s1 + $0x528] ss:$500 sps:$4 sm:$0xff]   ;;  %v434_v41 = vrot.slane %v420_v36, %v6229_v12  ;;  %v835_v44 = vrot.slane %v819_v25, %v6229_v12  ;;  %v5831_v45 = vld [vmem:[%s7167_s1 + $0x50] ss:$500 sps:$4 sm:$0xff]   ;;  %v826_v56 = vrot.slane %v812_v51, %v6229_v12 }
  0x87   :  { %v5830_v33 = vld [vmem:[%s7167_s1 + $0x52c] ss:$500 sps:$4 sm:$0xff]   ;;  %v5833_v39 = vld [vmem:[%s7167_s1 + $0x54] ss:$500 sps:$4 sm:$0xff]   ;;  %v5839_v47 = vld [vmem:[%s7167_s1 + $0x43c] ss:$500 sps:$4 sm:$0xff]  }
  0x88   :  { %v849_v35 = vrot.slane %v827_v26, %v6229_v12  ;;  %v5836_v40 = vld [vmem:[%s7167_s1 + $0x14c] ss:$500 sps:$4 sm:$0xff]   ;;  %v436_v42 = vcombine.high %v434_v41, %v434_v41  ;;  %v5834_v46 = vld [vmem:[%s7167_s1 + $0x148] ss:$500 sps:$4 sm:$0xff]   ;;  %v5840_v53 = vld [vmem:[%s7167_s1 + $0x530] ss:$500 sps:$4 sm:$0xff]   ;;  %v828_v57 = vcombine.high %v826_v56, %v826_v56  ;;  %v450_v58 = vrot.slane %v434_v41, %v6229_v12 }
  0x89   :  { %v5842_v48 = vld [vmem:[%s7167_s1 + $0x534] ss:$500 sps:$4 sm:$0xff]   ;;  %v5837_v52 = vld [vmem:[%s7167_s1 + $0x438] ss:$500 sps:$4 sm:$0xff]   ;;  %v5846_v54 = vld [vmem:[%s7167_s1 + $0x5c] ss:$500 sps:$4 sm:$0xff]   ;;  %v857_v59 = vcombine.high %v835_v44, %v835_v44  ;;  %v842_v10 = vrot.slane %v826_v56, %v6229_v12 }
  0x8a   :  { %v464_v49 = vrot.slane %v436_v42, %v6229_v12  ;;  %v859_v50 = vcombine.high %v849_v35, %v849_v35  ;;  %v5849_v55 = vld [vmem:[%s7167_s1 + $0x154] ss:$500 sps:$4 sm:$0xff]   ;;  %v5844_v60 = vld [vmem:[%s7167_s1 + $0x58] ss:$500 sps:$4 sm:$0xff]   ;;  %v5847_v61 = vld [vmem:[%s7167_s1 + $0x150] ss:$500 sps:$4 sm:$0xff]   ;;  %v856_v1 = vrot.slane %v828_v57, %v6229_v12  ;;  %v466_v9 = vcombine.high %v450_v58, %v450_v58 }
  0x8b   :  { %2796 = vmatpush1.bf16.xpose.msra.mxu1 %v5813_v20  ;;  %4036 = vmatpush1.bf16.xpose.msra.mxu0 %v5816_v21  ;;  %v5852_v62 = vld [vmem:[%s7167_s1 + $0x444] ss:$500 sps:$4 sm:$0xff]   ;;  %v5855_v63 = vld [vmem:[%s7167_s1 + $0x53c] ss:$500 sps:$4 sm:$0xff]   ;;  %v5850_v3 = vld [vmem:[%s7167_s1 + $0x440] ss:$500 sps:$4 sm:$0xff]  }
  0x8c   :  { %2833 = vmatprep.subr.bf16.mxu1 %v5821_v22  ;;  %4073 = vmatprep.subr.bf16.mxu0 %v5824_v23  ;;  %v468_v0 = vcombine.high %v464_v49, %v464_v49  ;;  %v34_v2 = vld [vmem:[%s7166_s0 + $0x18] sm:$0xff]  ;;  %v5856_v11 = vld [vmem:[%s7167_s1 + $0x60] ss:$500 sps:$4 sm:$0xff]   ;;  %v860_v17 = vcombine.high %v856_v1, %v856_v1  ;;  %v5875_v36 = vld [vmem:[%s7167_s1 + $0x450] ss:$500 sps:$4 sm:$0xff]   ;;  %vm5001_vm1 = vcmask 261120  }
  0x8d   :  { %v5853_v4 = vld [vmem:[%s7167_s1 + $0x538] ss:$500 sps:$4 sm:$0xff]   ;;  %v5862_v6 = vld [vmem:[%s7167_s1 + $0x15c] ss:$500 sps:$4 sm:$0xff]   ;;  %v476_v7 = vrot.slane %v34_v2, %v6229_v12  ;;  %v5866_v20 = vld [vmem:[%s7167_s1 + $0x540] ss:$500 sps:$4 sm:$0xff]  }
  0x8e   :  { %v5858_v5 = vld [vmem:[%s7167_s1 + $0x64] ss:$500 sps:$4 sm:$0xff]   ;;  %v5865_v14 = vld [vmem:[%s7167_s1 + $0x44c] ss:$500 sps:$4 sm:$0xff]   ;;  %v5863_v19 = vld [vmem:[%s7167_s1 + $0x448] ss:$500 sps:$4 sm:$0xff]  }
  0x8f   :  { %v484_v8 = vcombine.high %v476_v7, %v476_v7  ;;  %v5860_v13 = vld [vmem:[%s7167_s1 + $0x158] ss:$500 sps:$4 sm:$0xff]   ;;  %v492_v26 = vrot.slane %v476_v7, %v6229_v12  ;;  %vm5084_vm2 = vcmask 25600  }
  0x90   :  { %v5868_v15 = vld [vmem:[%s7167_s1 + $0x544] ss:$500 sps:$4 sm:$0xff]   ;;  %v5871_v21 = vld [vmem:[%s7167_s1 + $0x6c] ss:$500 sps:$4 sm:$0xff]  }
  0x91   :  { %v506_v16 = vrot.slane %v484_v8, %v6229_v12  ;;  %v42_v18 = vld [vmem:[%s7166_s0 + $0x58] sm:$0xff]  ;;  %v514_v42 = vcombine.high %v492_v26, %v492_v26 }
  0x92   :  { %2826 = vmatmul.mubr.bf16.vlgmr.msra.gmra.mrb[0].mxu1 %v443_v28  ;;  %4066 = vmatmul.mubr.bf16.vlgmr.msra.gmra.mrb[0].mxu0 %v809_v29  ;;  %v5874_v22 = vld [vmem:[%s7167_s1 + $0x164] ss:$500 sps:$4 sm:$0xff]   ;;  %v868_v23 = vrot.slane %v42_v18, %v6229_v12  ;;  %v858_v28 = vcombine.high %v842_v10, %v842_v10  ;;  %v5869_v29 = vld [vmem:[%s7167_s1 + $0x68] ss:$500 sps:$4 sm:$0xff]  }
  0x93   :  { %2834 = vmatpush1.bf16.xpose.msra.mxu1 %v5819_v30  ;;  %4074 = vmatpush1.bf16.xpose.msra.mxu0 %v5822_v31  ;;  %v5872_v30 = vld [vmem:[%s7167_s1 + $0x160] ss:$500 sps:$4 sm:$0xff]   ;;  %v5887_v51 = vld [vmem:[%s7167_s1 + $0x458] ss:$500 sps:$4 sm:$0xff]  }
  0x94   :  { %2835 = vmatprep.subr.bf16.mxu1 %v5827_v32  ;;  %4075 = vmatprep.subr.bf16.mxu0 %v5830_v33  ;;  %v876_v25 = vcombine.high %v868_v23, %v868_v23  ;;  %v5877_v31 = vld [vmem:[%s7167_s1 + $0x454] ss:$500 sps:$4 sm:$0xff]   ;;  %v5880_v32 = vld [vmem:[%s7167_s1 + $0x54c] ss:$500 sps:$4 sm:$0xff]   ;;  %v516_v33 = vcombine.high %v506_v16, %v506_v16 }
  0x95   :  { %2865 = vmatprep.mubr.bf16.mxu1 %v467_v34  ;;  %4105 = vmatprep.mubr.bf16.mxu0 %v849_v35  ;;  %v469_v35 = vcombine.high %v34_v2, %v34_v2  ;;  %v5900_v2 = vld [vmem:[%s7167_s1 + $0x460] ss:$500 sps:$4 sm:$0xff]  }
  0x96   :  { %v898_v34 = vrot.slane %v876_v25, %v6229_v12 }
  0x9b   :  { %2836 = vmatpush1.bf16.xpose.msra.mxu1 %v5825_v37  ;;  %4076 = vmatpush1.bf16.xpose.msra.mxu0 %v5828_v38  ;;  %v5878_v37 = vld [vmem:[%s7167_s1 + $0x548] ss:$500 sps:$4 sm:$0xff]  }
  0x9c   :  { %2873 = vmatprep.subr.bf16.mxu1 %v5833_v39  ;;  %4113 = vmatprep.subr.bf16.mxu0 %v5836_v40  ;;  %v5883_v38 = vld [vmem:[%s7167_s1 + $0x74] ss:$500 sps:$4 sm:$0xff]   ;;  %v5886_v39 = vld [vmem:[%s7167_s1 + $0x16c] ss:$500 sps:$4 sm:$0xff]   ;;  %v483_v40 = vrot.slane %v469_v35, %v6229_v12  ;;  %v5925_v35 = vld [vmem:[%s7167_s1 + $0x470] ss:$500 sps:$4 sm:$0xff]  }
  0x9e   :  { %v485_v41 = vcombine.high %v483_v40, %v483_v40  ;;  %v499_v57 = vrot.slane %v483_v40, %v6229_v12 }
  0xa0   :  { %v515_v8 = vcombine.high %v499_v57, %v499_v57 }
  0xa2   :  { %2866 = vmatmul.mubr.bf16.vlgmr.msra.gmra.mrb[0].mxu1 %v465_v43  ;;  %4106 = vmatmul.mubr.bf16.vlgmr.msra.gmra.mrb[0].mxu0 %v835_v44  ;;  %v884_v43 = vrot.slane %v868_v23, %v6229_v12  ;;  %v5881_v44 = vld [vmem:[%s7167_s1 + $0x70] ss:$500 sps:$4 sm:$0xff]  }
  0xa3   :  { %2874 = vmatpush1.bf16.xpose.msra.mxu1 %v5831_v45  ;;  %4114 = vmatpush1.bf16.xpose.msra.mxu0 %v5834_v46  ;;  %v5884_v45 = vld [vmem:[%s7167_s1 + $0x168] ss:$500 sps:$4 sm:$0xff]  }
  0xa4   :  { %2875 = vmatprep.subr.bf16.mxu1 %v5839_v47  ;;  %4115 = vmatprep.subr.bf16.mxu0 %v5842_v48  ;;  %v5889_v46 = vld [vmem:[%s7167_s1 + $0x45c] ss:$500 sps:$4 sm:$0xff]   ;;  %v5892_v47 = vld [vmem:[%s7167_s1 + $0x554] ss:$500 sps:$4 sm:$0xff]   ;;  %v513_v48 = vrot.slane %v485_v41, %v6229_v12 }
  0xa5   :  { %2905 = vmatprep.mubr.bf16.mxu1 %v464_v49  ;;  %4145 = vmatprep.mubr.bf16.mxu0 %v859_v50  ;;  %v908_v49 = vcombine.high %v898_v34, %v898_v34  ;;  %v861_v50 = vcombine.high %v42_v18, %v42_v18  ;;  %v5913_v18 = vld [vmem:[%s7167_s1 + $0x468] ss:$500 sps:$4 sm:$0xff]  }
  0xab   :  { %2876 = vmatpush1.bf16.xpose.msra.mxu1 %v5837_v52  ;;  %4116 = vmatpush1.bf16.xpose.msra.mxu0 %v5840_v53  ;;  %v5890_v52 = vld [vmem:[%s7167_s1 + $0x550] ss:$500 sps:$4 sm:$0xff]  }
  0xac   :  { %2913 = vmatprep.subr.bf16.mxu1 %v5846_v54  ;;  %4153 = vmatprep.subr.bf16.mxu0 %v5849_v55  ;;  %v5896_v53 = vld [vmem:[%s7167_s1 + $0x7c] ss:$500 sps:$4 sm:$0xff]   ;;  %v5899_v54 = vld [vmem:[%s7167_s1 + $0x174] ss:$500 sps:$4 sm:$0xff]   ;;  %v875_v55 = vrot.slane %v861_v50, %v6229_v12  ;;  %v5937_v50 = vld [vmem:[%s7167_s1 + $0x478] ss:$500 sps:$4 sm:$0xff]  }
  0xae   :  { %v877_v56 = vcombine.high %v875_v55, %v875_v55 }
  0xb2   :  { %2906 = vmatmul.mubr.bf16.vlgmr.msra.gmra.mrb[0].mxu1 %v450_v58  ;;  %4146 = vmatmul.mubr.bf16.vlgmr.msra.gmra.mrb[0].mxu0 %v857_v59  ;;  %v906_v58 = vcombine.high %v884_v43, %v884_v43  ;;  %v5894_v59 = vld [vmem:[%s7167_s1 + $0x78] ss:$500 sps:$4 sm:$0xff]  }
  0xb3   :  { %2914 = vmatpush1.bf16.xpose.msra.mxu1 %v5844_v60  ;;  %4154 = vmatpush1.bf16.xpose.msra.mxu0 %v5847_v61  ;;  %v5897_v60 = vld [vmem:[%s7167_s1 + $0x170] ss:$500 sps:$4 sm:$0xff]  }
  0xb4   :  { %2915 = vmatprep.subr.bf16.mxu1 %v5852_v62  ;;  %4155 = vmatprep.subr.bf16.mxu0 %v5855_v63  ;;  %v5902_v61 = vld [vmem:[%s7167_s1 + $0x464] ss:$500 sps:$4 sm:$0xff]   ;;  %v5905_v62 = vld [vmem:[%s7167_s1 + $0x55c] ss:$500 sps:$4 sm:$0xff]   ;;  %v517_v63 = vcombine.high %v513_v48, %v513_v48 }
  0xb5   :  { %2945 = vmatprep.mubr.bf16.mxu1 %v468_v0  ;;  %4185 = vmatprep.mubr.bf16.mxu0 %v856_v1  ;;  %v905_v0 = vrot.slane %v877_v56, %v6229_v12  ;;  %v35_v1 = vld [vmem:[%s7166_s0 + $0x20] sm:$0xff] }
  0xbb   :  { %2916 = vmatpush1.bf16.xpose.msra.mxu1 %v5850_v3  ;;  %4156 = vmatpush1.bf16.xpose.msra.mxu0 %v5853_v4  ;;  %v5903_v3 = vld [vmem:[%s7167_s1 + $0x558] ss:$500 sps:$4 sm:$0xff]  }
  0xbc   :  { %2953 = vmatprep.subr.bf16.mxu1 %v5858_v5  ;;  %4193 = vmatprep.subr.bf16.mxu0 %v5862_v6  ;;  %v5908_v4 = vld [vmem:[%s7167_s1 + $0x84] ss:$500 sps:$4 sm:$0xff]   ;;  %v5912_v5 = vld [vmem:[%s7167_s1 + $0x17c] ss:$500 sps:$4 sm:$0xff]   ;;  %v525_v6 = vrot.slane %v35_v1, %v6229_v12 }
  0xbe   :  { %v533_v7 = vcombine.high %v525_v6, %v525_v6  ;;  %v541_v25 = vrot.slane %v525_v6, %v6229_v12 }
  0xc0   :  { %v563_v41 = vcombine.high %v541_v25, %v541_v25 }
  0xc2   :  { %2946 = vmatmul.mubr.bf16.vlgmr.msra.gmra.mrb[0].mxu1 %v466_v9  ;;  %4186 = vmatmul.mubr.bf16.vlgmr.msra.gmra.mrb[0].mxu0 %v842_v10  ;;  %v891_v9 = vrot.slane %v875_v55, %v6229_v12  ;;  %v5906_v10 = vld [vmem:[%s7167_s1 + $0x80] ss:$500 sps:$4 sm:$0xff]  }
  0xc3   :  { %2954 = vmatpush1.bf16.xpose.msra.mxu1 %v5856_v11  ;;  %4194 = vmatpush1.bf16.xpose.msra.mxu0 %v5860_v13  ;;  %v5910_v11 = vld [vmem:[%s7167_s1 + $0x178] ss:$500 sps:$4 sm:$0xff]  }
  0xc4   :  { %2955 = vmatprep.subr.bf16.mxu1 %v5865_v14  ;;  %4195 = vmatprep.subr.bf16.mxu0 %v5868_v15  ;;  %v5915_v13 = vld [vmem:[%s7167_s1 + $0x46c] ss:$500 sps:$4 sm:$0xff]   ;;  %v5918_v14 = vld [vmem:[%s7167_s1 + $0x564] ss:$500 sps:$4 sm:$0xff]   ;;  %v555_v15 = vrot.slane %v533_v7, %v6229_v12 }
  0xc5   :  { %2985 = vmatprep.mubr.bf16.mxu1 %v506_v16  ;;  %4225 = vmatprep.mubr.bf16.mxu0 %v860_v17  ;;  %v909_v16 = vcombine.high %v905_v0, %v905_v0  ;;  %v43_v17 = vld [vmem:[%s7166_s0 + $0x60] sm:$0xff] }
  0xcb   :  { %2956 = vmatpush1.bf16.xpose.msra.mxu1 %v5863_v19  ;;  %4196 = vmatpush1.bf16.xpose.msra.mxu0 %v5866_v20  ;;  %v5916_v19 = vld [vmem:[%s7167_s1 + $0x560] ss:$500 sps:$4 sm:$0xff]  }
  0xcc   :  { %2993 = vmatprep.subr.bf16.mxu1 %v5871_v21  ;;  %4233 = vmatprep.subr.bf16.mxu0 %v5874_v22  ;;  %v5921_v20 = vld [vmem:[%s7167_s1 + $0x8c] ss:$500 sps:$4 sm:$0xff]   ;;  %v5924_v21 = vld [vmem:[%s7167_s1 + $0x184] ss:$500 sps:$4 sm:$0xff]   ;;  %v917_v22 = vrot.slane %v43_v17, %v6229_v12 }
  0xce   :  { %v925_v23 = vcombine.high %v917_v22, %v917_v22 }
  0xd2   :  { %2986 = vmatmul.mubr.bf16.vlgmr.msra.gmra.mrb[0].mxu1 %v492_v26  ;;  %4226 = vmatmul.mubr.bf16.vlgmr.msra.gmra.mrb[0].mxu0 %v858_v28  ;;  %v907_v26 = vcombine.high %v891_v9, %v891_v9  ;;  %v5919_v28 = vld [vmem:[%s7167_s1 + $0x88] ss:$500 sps:$4 sm:$0xff]  }
  0xd3   :  { %2994 = vmatpush1.bf16.xpose.msra.mxu1 %v5869_v29  ;;  %4234 = vmatpush1.bf16.xpose.msra.mxu0 %v5872_v30  ;;  %v5922_v29 = vld [vmem:[%s7167_s1 + $0x180] ss:$500 sps:$4 sm:$0xff]  }
  0xd4   :  { %2995 = vmatprep.subr.bf16.mxu1 %v5877_v31  ;;  %4235 = vmatprep.subr.bf16.mxu0 %v5880_v32  ;;  %v5927_v30 = vld [vmem:[%s7167_s1 + $0x474] ss:$500 sps:$4 sm:$0xff]   ;;  %v5930_v31 = vld [vmem:[%s7167_s1 + $0x56c] ss:$500 sps:$4 sm:$0xff]   ;;  %v565_v32 = vcombine.high %v555_v15, %v555_v15 }
  0xd5   :  { %3025 = vmatprep.mubr.bf16.mxu1 %v516_v33  ;;  %4265 = vmatprep.mubr.bf16.mxu0 %v898_v34  ;;  %v947_v33 = vrot.slane %v925_v23, %v6229_v12  ;;  %v518_v34 = vcombine.high %v35_v1, %v35_v1  ;;  %v5950_v1 = vld [vmem:[%s7167_s1 + $0x480] ss:$500 sps:$4 sm:$0xff]  }
  0xdb   :  { %2996 = vmatpush1.bf16.xpose.msra.mxu1 %v5875_v36  ;;  %4236 = vmatpush1.bf16.xpose.msra.mxu0 %v5878_v37  ;;  %v5928_v36 = vld [vmem:[%s7167_s1 + $0x568] ss:$500 sps:$4 sm:$0xff]  }
  0xdc   :  { %3033 = vmatprep.subr.bf16.mxu1 %v5883_v38  ;;  %4273 = vmatprep.subr.bf16.mxu0 %v5886_v39  ;;  %v5933_v37 = vld [vmem:[%s7167_s1 + $0x94] ss:$500 sps:$4 sm:$0xff]   ;;  %v5936_v38 = vld [vmem:[%s7167_s1 + $0x18c] ss:$500 sps:$4 sm:$0xff]   ;;  %v532_v39 = vrot.slane %v518_v34, %v6229_v12  ;;  %v5975_v34 = vld [vmem:[%s7167_s1 + $0x490] ss:$500 sps:$4 sm:$0xff]  }
  0xde   :  { %v534_v40 = vcombine.high %v532_v39, %v532_v39  ;;  %v548_v56 = vrot.slane %v532_v39, %v6229_v12 }
  0xe0   :  { %v564_v7 = vcombine.high %v548_v56, %v548_v56 }
  0xe2   :  { %3026 = vmatmul.mubr.bf16.vlgmr.msra.gmra.mrb[0].mxu1 %v514_v42  ;;  %4266 = vmatmul.mubr.bf16.vlgmr.msra.gmra.mrb[0].mxu0 %v884_v43  ;;  %v933_v42 = vrot.slane %v917_v22, %v6229_v12  ;;  %v5931_v43 = vld [vmem:[%s7167_s1 + $0x90] ss:$500 sps:$4 sm:$0xff]  }
  0xe3   :  { %3034 = vmatpush1.bf16.xpose.msra.mxu1 %v5881_v44  ;;  %4274 = vmatpush1.bf16.xpose.msra.mxu0 %v5884_v45  ;;  %v5934_v44 = vld [vmem:[%s7167_s1 + $0x188] ss:$500 sps:$4 sm:$0xff]  }
  0xe4   :  { %3035 = vmatprep.subr.bf16.mxu1 %v5889_v46  ;;  %4275 = vmatprep.subr.bf16.mxu0 %v5892_v47  ;;  %v5939_v45 = vld [vmem:[%s7167_s1 + $0x47c] ss:$500 sps:$4 sm:$0xff]   ;;  %v5942_v46 = vld [vmem:[%s7167_s1 + $0x574] ss:$500 sps:$4 sm:$0xff]   ;;  %v562_v47 = vrot.slane %v534_v40, %v6229_v12 }
  0xe5   :  { %3065 = vmatprep.mubr.bf16.mxu1 %v513_v48  ;;  %4305 = vmatprep.mubr.bf16.mxu0 %v908_v49  ;;  %v957_v48 = vcombine.high %v947_v33, %v947_v33  ;;  %v910_v49 = vcombine.high %v43_v17, %v43_v17  ;;  %v5963_v17 = vld [vmem:[%s7167_s1 + $0x488] ss:$500 sps:$4 sm:$0xff]  }
  0xeb   :  { %3036 = vmatpush1.bf16.xpose.msra.mxu1 %v5887_v51  ;;  %4276 = vmatpush1.bf16.xpose.msra.mxu0 %v5890_v52  ;;  %v5940_v51 = vld [vmem:[%s7167_s1 + $0x570] ss:$500 sps:$4 sm:$0xff]  }
  0xec   :  { %3073 = vmatprep.subr.bf16.mxu1 %v5896_v53  ;;  %4313 = vmatprep.subr.bf16.mxu0 %v5899_v54  ;;  %v5946_v52 = vld [vmem:[%s7167_s1 + $0x9c] ss:$500 sps:$4 sm:$0xff]   ;;  %v5949_v53 = vld [vmem:[%s7167_s1 + $0x194] ss:$500 sps:$4 sm:$0xff]   ;;  %v924_v54 = vrot.slane %v910_v49, %v6229_v12  ;;  %v5987_v49 = vld [vmem:[%s7167_s1 + $0x498] ss:$500 sps:$4 sm:$0xff]  }
  0xee   :  { %v926_v55 = vcombine.high %v924_v54, %v924_v54 }
  0xf2   :  { %3066 = vmatmul.mubr.bf16.vlgmr.msra.gmra.mrb[0].mxu1 %v499_v57  ;;  %4306 = vmatmul.mubr.bf16.vlgmr.msra.gmra.mrb[0].mxu0 %v906_v58  ;;  %v955_v57 = vcombine.high %v933_v42, %v933_v42  ;;  %v5944_v58 = vld [vmem:[%s7167_s1 + $0x98] ss:$500 sps:$4 sm:$0xff]  }
  0xf3   :  { %3074 = vmatpush1.bf16.xpose.msra.mxu1 %v5894_v59  ;;  %4314 = vmatpush1.bf16.xpose.msra.mxu0 %v5897_v60  ;;  %v5947_v59 = vld [vmem:[%s7167_s1 + $0x190] ss:$500 sps:$4 sm:$0xff]  }
  0xf4   :  { %3075 = vmatprep.subr.bf16.mxu1 %v5902_v61  ;;  %4315 = vmatprep.subr.bf16.mxu0 %v5905_v62  ;;  %v5952_v60 = vld [vmem:[%s7167_s1 + $0x484] ss:$500 sps:$4 sm:$0xff]   ;;  %v5955_v61 = vld [vmem:[%s7167_s1 + $0x57c] ss:$500 sps:$4 sm:$0xff]   ;;  %v566_v62 = vcombine.high %v562_v47, %v562_v47 }
  0xf5   :  { %3105 = vmatprep.mubr.bf16.mxu1 %v517_v63  ;;  %4345 = vmatprep.mubr.bf16.mxu0 %v905_v0  ;;  %v954_v63 = vrot.slane %v926_v55, %v6229_v12  ;;  %v36_v0 = vld [vmem:[%s7166_s0 + $0x28] sm:$0xff] }
  0xfb   :  { %3076 = vmatpush1.bf16.xpose.msra.mxu1 %v5900_v2  ;;  %4316 = vmatpush1.bf16.xpose.msra.mxu0 %v5903_v3  ;;  %v5953_v2 = vld [vmem:[%s7167_s1 + $0x578] ss:$500 sps:$4 sm:$0xff]  }
  0xfc   :  { %3113 = vmatprep.subr.bf16.mxu1 %v5908_v4  ;;  %4353 = vmatprep.subr.bf16.mxu0 %v5912_v5  ;;  %v5958_v3 = vld [vmem:[%s7167_s1 + $0xa4] ss:$500 sps:$4 sm:$0xff]   ;;  %v5962_v4 = vld [vmem:[%s7167_s1 + $0x19c] ss:$500 sps:$4 sm:$0xff]   ;;  %v574_v5 = vrot.slane %v36_v0, %v6229_v12 }
  0xfe   :  { %v582_v6 = vcombine.high %v574_v5, %v574_v5  ;;  %v590_v23 = vrot.slane %v574_v5, %v6229_v12 }
 0x100   :  { %v612_v40 = vcombine.high %v590_v23, %v590_v23 }
 0x102   :  { %3106 = vmatmul.mubr.bf16.vlgmr.msra.gmra.mrb[0].mxu1 %v515_v8  ;;  %4346 = vmatmul.mubr.bf16.vlgmr.msra.gmra.mrb[0].mxu0 %v891_v9  ;;  %v940_v8 = vrot.slane %v924_v54, %v6229_v12  ;;  %v5956_v9 = vld [vmem:[%s7167_s1 + $0xa0] ss:$500 sps:$4 sm:$0xff]  }
 0x103   :  { %3114 = vmatpush1.bf16.xpose.msra.mxu1 %v5906_v10  ;;  %4354 = vmatpush1.bf16.xpose.msra.mxu0 %v5910_v11  ;;  %v5960_v10 = vld [vmem:[%s7167_s1 + $0x198] ss:$500 sps:$4 sm:$0xff]  }
 0x104   :  { %3115 = vmatprep.subr.bf16.mxu1 %v5915_v13  ;;  %4355 = vmatprep.subr.bf16.mxu0 %v5918_v14  ;;  %v5965_v11 = vld [vmem:[%s7167_s1 + $0x48c] ss:$500 sps:$4 sm:$0xff]   ;;  %v5968_v13 = vld [vmem:[%s7167_s1 + $0x584] ss:$500 sps:$4 sm:$0xff]   ;;  %v604_v14 = vrot.slane %v582_v6, %v6229_v12 }
 0x105   :  { %3145 = vmatprep.mubr.bf16.mxu1 %v555_v15  ;;  %4385 = vmatprep.mubr.bf16.mxu0 %v909_v16  ;;  %v958_v15 = vcombine.high %v954_v63, %v954_v63  ;;  %v44_v16 = vld [vmem:[%s7166_s0 + $0x68] sm:$0xff] }
 0x10b   :  { %3116 = vmatpush1.bf16.xpose.msra.mxu1 %v5913_v18  ;;  %4356 = vmatpush1.bf16.xpose.msra.mxu0 %v5916_v19  ;;  %v5966_v18 = vld [vmem:[%s7167_s1 + $0x580] ss:$500 sps:$4 sm:$0xff]  }
 0x10c   :  { %3153 = vmatprep.subr.bf16.mxu1 %v5921_v20  ;;  %4393 = vmatprep.subr.bf16.mxu0 %v5924_v21  ;;  %v5971_v19 = vld [vmem:[%s7167_s1 + $0xac] ss:$500 sps:$4 sm:$0xff]   ;;  %v5974_v20 = vld [vmem:[%s7167_s1 + $0x1a4] ss:$500 sps:$4 sm:$0xff]   ;;  %v966_v21 = vrot.slane %v44_v16, %v6229_v12 }
 0x10e   :  { %v974_v22 = vcombine.high %v966_v21, %v966_v21 }
 0x112   :  { %3146 = vmatmul.mubr.bf16.vlgmr.msra.gmra.mrb[0].mxu1 %v541_v25  ;;  %4386 = vmatmul.mubr.bf16.vlgmr.msra.gmra.mrb[0].mxu0 %v907_v26  ;;  %v956_v25 = vcombine.high %v940_v8, %v940_v8  ;;  %v5969_v26 = vld [vmem:[%s7167_s1 + $0xa8] ss:$500 sps:$4 sm:$0xff]  }
 0x113   :  { %3154 = vmatpush1.bf16.xpose.msra.mxu1 %v5919_v28  ;;  %4394 = vmatpush1.bf16.xpose.msra.mxu0 %v5922_v29  ;;  %v5972_v28 = vld [vmem:[%s7167_s1 + $0x1a0] ss:$500 sps:$4 sm:$0xff]  }
 0x114   :  { %3155 = vmatprep.subr.bf16.mxu1 %v5927_v30  ;;  %4395 = vmatprep.subr.bf16.mxu0 %v5930_v31  ;;  %v5977_v29 = vld [vmem:[%s7167_s1 + $0x494] ss:$500 sps:$4 sm:$0xff]   ;;  %v5980_v30 = vld [vmem:[%s7167_s1 + $0x58c] ss:$500 sps:$4 sm:$0xff]   ;;  %v614_v31 = vcombine.high %v604_v14, %v604_v14 }
 0x115   :  { %3185 = vmatprep.mubr.bf16.mxu1 %v565_v32  ;;  %4425 = vmatprep.mubr.bf16.mxu0 %v947_v33  ;;  %v996_v32 = vrot.slane %v974_v22, %v6229_v12  ;;  %v567_v33 = vcombine.high %v36_v0, %v36_v0  ;;  %v6000_v0 = vld [vmem:[%s7167_s1 + $0x4a0] ss:$500 sps:$4 sm:$0xff]  }
 0x11b   :  { %3156 = vmatpush1.bf16.xpose.msra.mxu1 %v5925_v35  ;;  %4396 = vmatpush1.bf16.xpose.msra.mxu0 %v5928_v36  ;;  %v5978_v35 = vld [vmem:[%s7167_s1 + $0x588] ss:$500 sps:$4 sm:$0xff]  }
 0x11c   :  { %3193 = vmatprep.subr.bf16.mxu1 %v5933_v37  ;;  %4433 = vmatprep.subr.bf16.mxu0 %v5936_v38  ;;  %v5983_v36 = vld [vmem:[%s7167_s1 + $0xb4] ss:$500 sps:$4 sm:$0xff]   ;;  %v5986_v37 = vld [vmem:[%s7167_s1 + $0x1ac] ss:$500 sps:$4 sm:$0xff]   ;;  %v581_v38 = vrot.slane %v567_v33, %v6229_v12  ;;  %v6025_v33 = vld [vmem:[%s7167_s1 + $0x4b0] ss:$500 sps:$4 sm:$0xff]  }
 0x11e   :  { %v583_v39 = vcombine.high %v581_v38, %v581_v38  ;;  %v597_v55 = vrot.slane %v581_v38, %v6229_v12 }
 0x120   :  { %v613_v6 = vcombine.high %v597_v55, %v597_v55 }
 0x122   :  { %3186 = vmatmul.mubr.bf16.vlgmr.msra.gmra.mrb[0].mxu1 %v563_v41  ;;  %4426 = vmatmul.mubr.bf16.vlgmr.msra.gmra.mrb[0].mxu0 %v933_v42  ;;  %v982_v41 = vrot.slane %v966_v21, %v6229_v12  ;;  %v5981_v42 = vld [vmem:[%s7167_s1 + $0xb0] ss:$500 sps:$4 sm:$0xff]  }
 0x123   :  { %3194 = vmatpush1.bf16.xpose.msra.mxu1 %v5931_v43  ;;  %4434 = vmatpush1.bf16.xpose.msra.mxu0 %v5934_v44  ;;  %v5984_v43 = vld [vmem:[%s7167_s1 + $0x1a8] ss:$500 sps:$4 sm:$0xff]  }
 0x124   :  { %3195 = vmatprep.subr.bf16.mxu1 %v5939_v45  ;;  %4435 = vmatprep.subr.bf16.mxu0 %v5942_v46  ;;  %v5989_v44 = vld [vmem:[%s7167_s1 + $0x49c] ss:$500 sps:$4 sm:$0xff]   ;;  %v5992_v45 = vld [vmem:[%s7167_s1 + $0x594] ss:$500 sps:$4 sm:$0xff]   ;;  %v611_v46 = vrot.slane %v583_v39, %v6229_v12 }
 0x125   :  { %3225 = vmatprep.mubr.bf16.mxu1 %v562_v47  ;;  %4465 = vmatprep.mubr.bf16.mxu0 %v957_v48  ;;  %v1006_v47 = vcombine.high %v996_v32, %v996_v32  ;;  %v959_v48 = vcombine.high %v44_v16, %v44_v16  ;;  %v6013_v16 = vld [vmem:[%s7167_s1 + $0x4a8] ss:$500 sps:$4 sm:$0xff]  }
 0x12b   :  { %3196 = vmatpush1.bf16.xpose.msra.mxu1 %v5937_v50  ;;  %4436 = vmatpush1.bf16.xpose.msra.mxu0 %v5940_v51  ;;  %v5990_v50 = vld [vmem:[%s7167_s1 + $0x590] ss:$500 sps:$4 sm:$0xff]  }
 0x12c   :  { %3233 = vmatprep.subr.bf16.mxu1 %v5946_v52  ;;  %4473 = vmatprep.subr.bf16.mxu0 %v5949_v53  ;;  %v5996_v51 = vld [vmem:[%s7167_s1 + $0xbc] ss:$500 sps:$4 sm:$0xff]   ;;  %v5999_v52 = vld [vmem:[%s7167_s1 + $0x1b4] ss:$500 sps:$4 sm:$0xff]   ;;  %v973_v53 = vrot.slane %v959_v48, %v6229_v12  ;;  %v6037_v48 = vld [vmem:[%s7167_s1 + $0x4b8] ss:$500 sps:$4 sm:$0xff]  }
 0x12e   :  { %v975_v54 = vcombine.high %v973_v53, %v973_v53 }
 0x132   :  { %3226 = vmatmul.mubr.bf16.vlgmr.msra.gmra.mrb[0].mxu1 %v548_v56  ;;  %4466 = vmatmul.mubr.bf16.vlgmr.msra.gmra.mrb[0].mxu0 %v955_v57  ;;  %v1004_v56 = vcombine.high %v982_v41, %v982_v41  ;;  %v5994_v57 = vld [vmem:[%s7167_s1 + $0xb8] ss:$500 sps:$4 sm:$0xff]  }
 0x133   :  { %3234 = vmatpush1.bf16.xpose.msra.mxu1 %v5944_v58  ;;  %4474 = vmatpush1.bf16.xpose.msra.mxu0 %v5947_v59  ;;  %v5997_v58 = vld [vmem:[%s7167_s1 + $0x1b0] ss:$500 sps:$4 sm:$0xff]  }
 0x134   :  { %3235 = vmatprep.subr.bf16.mxu1 %v5952_v60  ;;  %4475 = vmatprep.subr.bf16.mxu0 %v5955_v61  ;;  %v6002_v59 = vld [vmem:[%s7167_s1 + $0x4a4] ss:$500 sps:$4 sm:$0xff]   ;;  %v6005_v60 = vld [vmem:[%s7167_s1 + $0x59c] ss:$500 sps:$4 sm:$0xff]   ;;  %v615_v61 = vcombine.high %v611_v46, %v611_v46 }
 0x135   :  { %3265 = vmatprep.mubr.bf16.mxu1 %v566_v62  ;;  %4505 = vmatprep.mubr.bf16.mxu0 %v954_v63  ;;  %v1003_v62 = vrot.slane %v975_v54, %v6229_v12  ;;  %v37_v63 = vld [vmem:[%s7166_s0 + $0x30] sm:$0xff] }
 0x13b   :  { %3236 = vmatpush1.bf16.xpose.msra.mxu1 %v5950_v1  ;;  %4476 = vmatpush1.bf16.xpose.msra.mxu0 %v5953_v2  ;;  %v6003_v1 = vld [vmem:[%s7167_s1 + $0x598] ss:$500 sps:$4 sm:$0xff]  }
 0x13c   :  { %3273 = vmatprep.subr.bf16.mxu1 %v5958_v3  ;;  %4513 = vmatprep.subr.bf16.mxu0 %v5962_v4  ;;  %v6008_v2 = vld [vmem:[%s7167_s1 + $0xc4] ss:$500 sps:$4 sm:$0xff]   ;;  %v6012_v3 = vld [vmem:[%s7167_s1 + $0x1bc] ss:$500 sps:$4 sm:$0xff]   ;;  %v623_v4 = vrot.slane %v37_v63, %v6229_v12 }
 0x13e   :  { %v631_v5 = vcombine.high %v623_v4, %v623_v4  ;;  %v639_v22 = vrot.slane %v623_v4, %v6229_v12 }
 0x140   :  { %v661_v39 = vcombine.high %v639_v22, %v639_v22 }
 0x142   :  { %3266 = vmatmul.mubr.bf16.vlgmr.msra.gmra.mrb[0].mxu1 %v564_v7  ;;  %4506 = vmatmul.mubr.bf16.vlgmr.msra.gmra.mrb[0].mxu0 %v940_v8  ;;  %v989_v7 = vrot.slane %v973_v53, %v6229_v12  ;;  %v6006_v8 = vld [vmem:[%s7167_s1 + $0xc0] ss:$500 sps:$4 sm:$0xff]  }
 0x143   :  { %3274 = vmatpush1.bf16.xpose.msra.mxu1 %v5956_v9  ;;  %4514 = vmatpush1.bf16.xpose.msra.mxu0 %v5960_v10  ;;  %v6010_v9 = vld [vmem:[%s7167_s1 + $0x1b8] ss:$500 sps:$4 sm:$0xff]  }
 0x144   :  { %3275 = vmatprep.subr.bf16.mxu1 %v5965_v11  ;;  %4515 = vmatprep.subr.bf16.mxu0 %v5968_v13  ;;  %v6015_v10 = vld [vmem:[%s7167_s1 + $0x4ac] ss:$500 sps:$4 sm:$0xff]   ;;  %v6018_v11 = vld [vmem:[%s7167_s1 + $0x5a4] ss:$500 sps:$4 sm:$0xff]   ;;  %v653_v13 = vrot.slane %v631_v5, %v6229_v12 }
 0x145   :  { %3305 = vmatprep.mubr.bf16.mxu1 %v604_v14  ;;  %4545 = vmatprep.mubr.bf16.mxu0 %v958_v15  ;;  %v1007_v14 = vcombine.high %v1003_v62, %v1003_v62  ;;  %v45_v15 = vld [vmem:[%s7166_s0 + $0x70] sm:$0xff] }
 0x14b   :  { %3276 = vmatpush1.bf16.xpose.msra.mxu1 %v5963_v17  ;;  %4516 = vmatpush1.bf16.xpose.msra.mxu0 %v5966_v18  ;;  %v6016_v17 = vld [vmem:[%s7167_s1 + $0x5a0] ss:$500 sps:$4 sm:$0xff]  }
 0x14c   :  { %3313 = vmatprep.subr.bf16.mxu1 %v5971_v19  ;;  %4553 = vmatprep.subr.bf16.mxu0 %v5974_v20  ;;  %v6021_v18 = vld [vmem:[%s7167_s1 + $0xcc] ss:$500 sps:$4 sm:$0xff]   ;;  %v6024_v19 = vld [vmem:[%s7167_s1 + $0x1c4] ss:$500 sps:$4 sm:$0xff]   ;;  %v1015_v20 = vrot.slane %v45_v15, %v6229_v12 }
 0x14e   :  { %v1023_v21 = vcombine.high %v1015_v20, %v1015_v20 }
 0x152   :  { %3306 = vmatmul.mubr.bf16.vlgmr.msra.gmra.mrb[0].mxu1 %v590_v23  ;;  %4546 = vmatmul.mubr.bf16.vlgmr.msra.gmra.mrb[0].mxu0 %v956_v25  ;;  %v1005_v23 = vcombine.high %v989_v7, %v989_v7  ;;  %v6019_v25 = vld [vmem:[%s7167_s1 + $0xc8] ss:$500 sps:$4 sm:$0xff]  }
 0x153   :  { %3314 = vmatpush1.bf16.xpose.msra.mxu1 %v5969_v26  ;;  %4554 = vmatpush1.bf16.xpose.msra.mxu0 %v5972_v28  ;;  %v6022_v26 = vld [vmem:[%s7167_s1 + $0x1c0] ss:$500 sps:$4 sm:$0xff]  }
 0x154   :  { %3315 = vmatprep.subr.bf16.mxu1 %v5977_v29  ;;  %4555 = vmatprep.subr.bf16.mxu0 %v5980_v30  ;;  %v6027_v28 = vld [vmem:[%s7167_s1 + $0x4b4] ss:$500 sps:$4 sm:$0xff]   ;;  %v6030_v29 = vld [vmem:[%s7167_s1 + $0x5ac] ss:$500 sps:$4 sm:$0xff]   ;;  %v663_v30 = vcombine.high %v653_v13, %v653_v13 }
 0x155   :  { %3345 = vmatprep.mubr.bf16.mxu1 %v614_v31  ;;  %4585 = vmatprep.mubr.bf16.mxu0 %v996_v32  ;;  %v1045_v31 = vrot.slane %v1023_v21, %v6229_v12  ;;  %v616_v32 = vcombine.high %v37_v63, %v37_v63  ;;  %v6053_v63 = vld [vmem:[%s7167_s1 + $0x5b8] ss:$500 sps:$4 sm:$0xff]  }
 0x15b   :  { %3316 = vmatpush1.bf16.xpose.msra.mxu1 %v5975_v34  ;;  %4556 = vmatpush1.bf16.xpose.msra.mxu0 %v5978_v35  ;;  %v6028_v34 = vld [vmem:[%s7167_s1 + $0x5a8] ss:$500 sps:$4 sm:$0xff]  }
 0x15c   :  { %3353 = vmatprep.subr.bf16.mxu1 %v5983_v36  ;;  %4593 = vmatprep.subr.bf16.mxu0 %v5986_v37  ;;  %v6033_v35 = vld [vmem:[%s7167_s1 + $0xd4] ss:$500 sps:$4 sm:$0xff]   ;;  %v6036_v36 = vld [vmem:[%s7167_s1 + $0x1cc] ss:$500 sps:$4 sm:$0xff]   ;;  %v630_v37 = vrot.slane %v616_v32, %v6229_v12 }
 0x15d   :  { %v6083_v32 = vld [vmem:[%s7167_s1 + $0xf4] ss:$500 sps:$4 sm:$0xff]  }
 0x15e   :  { %v632_v38 = vcombine.high %v630_v37, %v630_v37  ;;  %v646_v54 = vrot.slane %v630_v37, %v6229_v12  ;;  %v6085_v37 = vld [vmem:[%s7167_s1 + $0x1e8] ss:$500 sps:$4 sm:$0xff]  }
 0x160   :  { %v662_v4 = vcombine.high %v646_v54, %v646_v54 }
 0x162   :  { %3346 = vmatmul.mubr.bf16.vlgmr.msra.gmra.mrb[0].mxu1 %v612_v40  ;;  %4586 = vmatmul.mubr.bf16.vlgmr.msra.gmra.mrb[0].mxu0 %v982_v41  ;;  %v1031_v40 = vrot.slane %v1015_v20, %v6229_v12  ;;  %v6031_v41 = vld [vmem:[%s7167_s1 + $0xd0] ss:$500 sps:$4 sm:$0xff]  }
 0x163   :  { %3354 = vmatpush1.bf16.xpose.msra.mxu1 %v5981_v42  ;;  %4594 = vmatpush1.bf16.xpose.msra.mxu0 %v5984_v43  ;;  %v6034_v42 = vld [vmem:[%s7167_s1 + $0x1c8] ss:$500 sps:$4 sm:$0xff]  }
 0x164   :  { %3355 = vmatprep.subr.bf16.mxu1 %v5989_v44  ;;  %4595 = vmatprep.subr.bf16.mxu0 %v5992_v45  ;;  %v6039_v43 = vld [vmem:[%s7167_s1 + $0x4bc] ss:$500 sps:$4 sm:$0xff]   ;;  %v6042_v44 = vld [vmem:[%s7167_s1 + $0x5b4] ss:$500 sps:$4 sm:$0xff]   ;;  %v660_v45 = vrot.slane %v632_v38, %v6229_v12 }
 0x165   :  { %3385 = vmatprep.mubr.bf16.mxu1 %v611_v46  ;;  %4625 = vmatprep.mubr.bf16.mxu0 %v1006_v47  ;;  %v1055_v46 = vcombine.high %v1045_v31, %v1045_v31  ;;  %v1008_v47 = vcombine.high %v45_v15, %v45_v15  ;;  %v6066_v15 = vld [vmem:[%s7167_s1 + $0x5c0] ss:$500 sps:$4 sm:$0xff]   ;;  %v6090_v38 = vld [vmem:[%s7167_s1 + $0x4dc] ss:$500 sps:$4 sm:$0xff]  }
 0x16b   :  { %3356 = vmatpush1.bf16.xpose.msra.mxu1 %v5987_v49  ;;  %4596 = vmatpush1.bf16.xpose.msra.mxu0 %v5990_v50  ;;  %v6040_v49 = vld [vmem:[%s7167_s1 + $0x5b0] ss:$500 sps:$4 sm:$0xff]  }
 0x16c   :  { %3393 = vmatprep.subr.bf16.mxu1 %v5996_v51  ;;  %4633 = vmatprep.subr.bf16.mxu0 %v5999_v52  ;;  %v6046_v50 = vld [vmem:[%s7167_s1 + $0xdc] ss:$500 sps:$4 sm:$0xff]   ;;  %v6049_v51 = vld [vmem:[%s7167_s1 + $0x1d4] ss:$500 sps:$4 sm:$0xff]   ;;  %v1022_v52 = vrot.slane %v1008_v47, %v6229_v12 }
 0x16e   :  { %v1024_v53 = vcombine.high %v1022_v52, %v1022_v52  ;;  %v1038_v5 = vrot.slane %v1022_v52, %v6229_v12 }
 0x170   :  { %v1054_v21 = vcombine.high %v1038_v5, %v1038_v5 }
 0x172   :  { %3386 = vmatmul.mubr.bf16.vlgmr.msra.gmra.mrb[0].mxu1 %v597_v55  ;;  %4626 = vmatmul.mubr.bf16.vlgmr.msra.gmra.mrb[0].mxu0 %v1004_v56  ;;  %v1053_v55 = vcombine.high %v1031_v40, %v1031_v40  ;;  %v6044_v56 = vld [vmem:[%s7167_s1 + $0xd8] ss:$500 sps:$4 sm:$0xff]  }
 0x173   :  { %3394 = vmatpush1.bf16.xpose.msra.mxu1 %v5994_v57  ;;  %4634 = vmatpush1.bf16.xpose.msra.mxu0 %v5997_v58  ;;  %v6047_v57 = vld [vmem:[%s7167_s1 + $0x1d0] ss:$500 sps:$4 sm:$0xff]  }
 0x174   :  { %3395 = vmatprep.subr.bf16.mxu1 %v6002_v59  ;;  %4635 = vmatprep.subr.bf16.mxu0 %v6005_v60  ;;  %v6052_v58 = vld [vmem:[%s7167_s1 + $0x4c4] ss:$500 sps:$4 sm:$0xff]   ;;  %v6055_v59 = vld [vmem:[%s7167_s1 + $0x5bc] ss:$500 sps:$4 sm:$0xff]   ;;  %v664_v60 = vcombine.high %v660_v45, %v660_v45 }
 0x175   :  { %3425 = vmatprep.mubr.bf16.mxu1 %v615_v61  ;;  %4665 = vmatprep.mubr.bf16.mxu0 %v1003_v62  ;;  %v1052_v61 = vrot.slane %v1024_v53, %v6229_v12  ;;  %v6050_v62 = vld [vmem:[%s7167_s1 + $0x4c0] ss:$500 sps:$4 sm:$0xff]  }
 0x176   :  { %v5180_v53 = vld [vmem:[%s7168_s2] ss:$0 sm:$0xff] }
 0x17b   :  { %3396 = vmatpush1.bf16.xpose.msra.mxu1 %v6000_v0  ;;  %4636 = vmatpush1.bf16.xpose.msra.mxu0 %v6003_v1  ;;  %v6058_v0 = vld [vmem:[%s7167_s1 + $0xe4] ss:$500 sps:$4 sm:$0xff]   ;;  %v6062_v1 = vld [vmem:[%s7167_s1 + $0x1dc] ss:$500 sps:$4 sm:$0xff]  }
 0x17c   :  { %3433 = vmatprep.subr.bf16.mxu1 %v6008_v2  ;;  %4673 = vmatprep.subr.bf16.mxu0 %v6012_v3  ;;  %v6109_v2 = vld.sshfl [vmem:[%s7166_s0 + $0x38] sm:$0xff pattern:$0x75316420] }
 0x17d   :  { %v680_v3 = vcombine.high %v6109_v2, %v6109_v2  ;;  %v688_v20 = vrot.slane %v6109_v2, %v6229_v12 }
 0x182   :  { %3426 = vmatmul.mubr.bf16.vlgmr.msra.gmra.mrb[0].mxu1 %v613_v6  ;;  %4666 = vmatmul.mubr.bf16.vlgmr.msra.gmra.mrb[0].mxu0 %v989_v7  ;;  %v6056_v6 = vld [vmem:[%s7167_s1 + $0xe0] ss:$500 sps:$4 sm:$0xff]   ;;  %v6060_v7 = vld [vmem:[%s7167_s1 + $0x1d8] ss:$500 sps:$4 sm:$0xff]  }
 0x183   :  { %3434 = vmatpush1.bf16.xpose.msra.mxu1 %v6006_v8  ;;  %4674 = vmatpush1.bf16.xpose.msra.mxu0 %v6010_v9  ;;  %v6065_v8 = vld [vmem:[%s7167_s1 + $0x4cc] ss:$500 sps:$4 sm:$0xff]   ;;  %v6068_v9 = vld [vmem:[%s7167_s1 + $0x5c4] ss:$500 sps:$4 sm:$0xff]  }
 0x184   :  { %3435 = vmatprep.subr.bf16.mxu1 %v6015_v10  ;;  %4675 = vmatprep.subr.bf16.mxu0 %v6018_v11  ;;  %v702_v10 = vrot.slane %v680_v3, %v6229_v12  ;;  %v1056_v11 = vcombine.high %v1052_v61, %v1052_v61 }
 0x185   :  { %3465 = vmatprep.mubr.bf16.mxu1 %v653_v13  ;;  %4705 = vmatprep.mubr.bf16.mxu0 %v1007_v14  ;;  %v7052_v13 = vld [vmem:[%s7166_s0 + $0x78] sm:$0x1f] }
 0x186   :  { %v6063_v14 = vld [vmem:[%s7167_s1 + $0x4c8] ss:$500 sps:$4 sm:$0xff]  }
 0x18b   :  { %3436 = vmatpush1.bf16.xpose.msra.mxu1 %v6013_v16  ;;  %4676 = vmatpush1.bf16.xpose.msra.mxu0 %v6016_v17  ;;  %v6071_v16 = vld [vmem:[%s7167_s1 + $0xec] ss:$500 sps:$4 sm:$0xff]   ;;  %v6074_v17 = vld [vmem:[%s7167_s1 + $0x1e4] ss:$500 sps:$4 sm:$0xff]  }
 0x18c   :  { %3473 = vmatprep.subr.bf16.mxu1 %v6021_v18  ;;  %4713 = vmatprep.subr.bf16.mxu0 %v6024_v19  ;;  %v1064_v18 = vrot.slane %v7052_v13, %v6229_v12 }
 0x18e   :  { %v1072_v19 = vcombine.high %v1064_v18, %v1064_v18 }
 0x192   :  { %3466 = vmatmul.mubr.bf16.vlgmr.msra.gmra.mrb[0].mxu1 %v639_v22  ;;  %4706 = vmatmul.mubr.bf16.vlgmr.msra.gmra.mrb[0].mxu0 %v1005_v23  ;;  %v6069_v22 = vld [vmem:[%s7167_s1 + $0xe8] ss:$500 sps:$4 sm:$0xff]   ;;  %v6072_v23 = vld [vmem:[%s7167_s1 + $0x1e0] ss:$500 sps:$4 sm:$0xff]  }
 0x193   :  { %3474 = vmatpush1.bf16.xpose.msra.mxu1 %v6019_v25  ;;  %4714 = vmatpush1.bf16.xpose.msra.mxu0 %v6022_v26  ;;  %v6077_v25 = vld [vmem:[%s7167_s1 + $0x4d4] ss:$500 sps:$4 sm:$0xff]   ;;  %v6080_v26 = vld [vmem:[%s7167_s1 + $0x5cc] ss:$500 sps:$4 sm:$0xff]  }
 0x194   :  { %3475 = vmatprep.subr.bf16.mxu1 %v6027_v28  ;;  %4715 = vmatprep.subr.bf16.mxu0 %v6030_v29  ;;  %v712_v28 = vcombine.high %v702_v10, %v702_v10  ;;  %v1093_v29 = vrot.slane %v1072_v19, %v6229_v12 }
 0x195   :  { %3505 = vmatprep.mubr.bf16.mxu1 %v663_v30  ;;  %4745 = vmatprep.mubr.bf16.mxu0 %v1045_v31  ;;  %v6075_v30 = vld [vmem:[%s7167_s1 + $0x4d0] ss:$500 sps:$4 sm:$0xff]   ;;  %v6078_v31 = vld [vmem:[%s7167_s1 + $0x5c8] ss:$500 sps:$4 sm:$0xff]  }
 0x19b   :  { %3476 = vmatpush1.bf16.xpose.msra.mxu1 %v6025_v33  ;;  %4716 = vmatpush1.bf16.xpose.msra.mxu0 %v6028_v34  ;;  %v6087_v33 = vld [vmem:[%s7167_s1 + $0x1ec] ss:$500 sps:$4 sm:$0xff]   ;;  %v710_v34 = vcombine.high %v688_v20, %v688_v20 }
 0x19c   :  { %3513 = vmatprep.subr.bf16.mxu1 %v6033_v35  ;;  %4753 = vmatprep.subr.bf16.mxu0 %v6036_v36  ;;  %v1079_v35 = vrot.slane %v1064_v18, %v6229_v12  ;;  %v6081_v36 = vld [vmem:[%s7167_s1 + $0xf0] ss:$500 sps:$4 sm:$0xff]  }
 0x1a2   :  { %3506 = vmatmul.mubr.bf16.vlgmr.msra.gmra.mrb[0].mxu1 %v661_v39  ;;  %4746 = vmatmul.mubr.bf16.vlgmr.msra.gmra.mrb[0].mxu0 %v1031_v40  ;;  %v6093_v39 = vld [vmem:[%s7167_s1 + $0x5d4] ss:$500 sps:$4 sm:$0xff]   ;;  %v1095_v40 = vcombine.high %v1093_v29, %v1093_v29 }
 0x1a3   :  { %3514 = vmatpush1.bf16.xpose.msra.mxu1 %v6031_v41  ;;  %4754 = vmatpush1.bf16.xpose.msra.mxu0 %v6034_v42  ;;  %v6088_v41 = vld [vmem:[%s7167_s1 + $0x4d8] ss:$500 sps:$4 sm:$0xff]   ;;  %v6091_v42 = vld [vmem:[%s7167_s1 + $0x5d0] ss:$500 sps:$4 sm:$0xff]  }
 0x1a4   :  { %3515 = vmatprep.subr.bf16.mxu1 %v6039_v43  ;;  %4755 = vmatprep.subr.bf16.mxu0 %v6042_v44  ;;  %v6159_v43 = vmov 0.0   ;;  %v1094_v44 = vcombine.high %v1079_v35, %v1079_v35 }
 0x1a5   :  { %3545 = vmatprep.mubr.bf16.mxu1 %v660_v45  ;;  %4785 = vmatprep.mubr.bf16.mxu0 %v1055_v46  ;;  %v6094_v45 = vld [vmem:[%s7167_s1 + $0x1f0] ss:$500 sps:$4 sm:$0xff]   ;;  %v6095_v46 = vld [vmem:[%s7167_s1 + $0x5d8] ss:$500 sps:$4 sm:$0xff]  }
 0x1ab   :  { %3516 = vmatpush1.bf16.xpose.msra.mxu1 %v6037_v48  ;;  %4756 = vmatpush1.bf16.xpose.msra.mxu0 %v6040_v49 }
 0x1ac   :  { %3553 = vmatprep.subr.bf16.mxu1 %v6046_v50  ;;  %4793 = vmatprep.subr.bf16.mxu0 %v6049_v51 }
 0x1b2   :  { %3546 = vmatmul.mubr.bf16.vlgmr.msra.gmra.mrb[0].mxu1 %v646_v54  ;;  %4786 = vmatmul.mubr.bf16.vlgmr.msra.gmra.mrb[0].mxu0 %v1053_v55 }
 0x1b3   :  { %3554 = vmatpush1.bf16.xpose.msra.mxu1 %v6044_v56  ;;  %4794 = vmatpush1.bf16.xpose.msra.mxu0 %v6047_v57 }
 0x1b4   :  { %3555 = vmatprep.subr.bf16.mxu1 %v6052_v58  ;;  %4795 = vmatprep.subr.bf16.mxu0 %v6055_v59  ;;  %v5431_v59 = vld [vmem:[%s7170_s4] ss:$0 sm:$0xff] }
 0x1b5   :  { %3585 = vmatprep.mubr.bf16.mxu1 %v664_v60  ;;  %4825 = vmatprep.mubr.bf16.mxu0 %v1052_v61 }
 0x1bb   :  { %3556 = vmatpush1.bf16.xpose.msra.mxu1 %v6050_v62  ;;  %4796 = vmatpush1.bf16.xpose.msra.mxu0 %v6053_v63 }
 0x1bc   :  { %3593 = vmatprep.subr.bf16.mxu1 %v6058_v0  ;;  %4833 = vmatprep.subr.bf16.mxu0 %v6062_v1 }
 0x1c2   :  { %3586 = vmatmul.mubr.bf16.vlgmr.msra.gmra.mrb[0].mxu1 %v662_v4  ;;  %4826 = vmatmul.mubr.bf16.vlgmr.msra.gmra.mrb[0].mxu0 %v1038_v5 }
 0x1c3   :  { %3594 = vmatpush1.bf16.xpose.msra.mxu1 %v6056_v6  ;;  %4834 = vmatpush1.bf16.xpose.msra.mxu0 %v6060_v7 }
 0x1c4   :  { %3595 = vmatprep.subr.bf16.mxu1 %v6065_v8  ;;  %4835 = vmatprep.subr.bf16.mxu0 %v6068_v9 }
 0x1c5   :  { %3625 = vmatprep.mubr.bf16.mxu1 %v702_v10  ;;  %4865 = vmatprep.mubr.bf16.mxu0 %v1056_v11 }
 0x1cb   :  { %3596 = vmatpush1.bf16.xpose.msra.mxu1 %v6063_v14  ;;  %4836 = vmatpush1.bf16.xpose.msra.mxu0 %v6066_v15 }
 0x1cc   :  { %3633 = vmatprep.subr.bf16.mxu1 %v6071_v16  ;;  %4873 = vmatprep.subr.bf16.mxu0 %v6074_v17 }
 0x1d2   :  { %3626 = vmatmul.mubr.bf16.vlgmr.msra.gmra.mrb[0].mxu1 %v688_v20  ;;  %4866 = vmatmul.mubr.bf16.vlgmr.msra.gmra.mrb[0].mxu0 %v1054_v21 }
 0x1d3   :  { %3634 = vmatpush1.bf16.xpose.msra.mxu1 %v6069_v22  ;;  %4874 = vmatpush1.bf16.xpose.msra.mxu0 %v6072_v23 }
 0x1d4   :  { %3635 = vmatprep.subr.bf16.mxu1 %v6077_v25  ;;  %4875 = vmatprep.subr.bf16.mxu0 %v6080_v26 }
 0x1d5   :  { %3665 = vmatprep.mubr.bf16.mxu1 %v712_v28  ;;  %4905 = vmatprep.mubr.bf16.mxu0 %v1093_v29 }
 0x1db   :  { %3636 = vmatpush1.bf16.xpose.msra.mxu1 %v6075_v30  ;;  %4876 = vmatpush1.bf16.xpose.msra.mxu0 %v6078_v31 }
 0x1dc   :  { %3673 = vmatprep.subr.bf16.mxu1 %v6083_v32  ;;  %4913 = vmatprep.subr.bf16.mxu0 %v6087_v33 }
 0x1e2   :  { %3666 = vmatmul.mubr.bf16.vlgmr.msra.gmra.mrb[0].mxu1 %v710_v34  ;;  %4906 = vmatmul.mubr.bf16.vlgmr.msra.gmra.mrb[0].mxu0 %v1079_v35  ;;  %v5086_v35 = vld [vmem:[%s7171_s5] sm:$0x3]  ;;  %s6161_s5 = smov [#allocation2]  }
 0x1e3   :  { %3674 = vmatpush1.bf16.xpose.msra.mxu1 %v6081_v36  ;;  %4914 = vmatpush1.bf16.xpose.msra.mxu0 %v6085_v37  ;;  %s5158_s15 = sshll.u32 %s6161_s5, 4  ;;  %s5159_s15 = int_to_ptr.vmem [resolvable:$true] %s5158_s15 }
 0x1e4   :  { %3675 = vmatprep.subr.bf16.mxu1 %v6090_v38  ;;  %4915 = vmatprep.subr.bf16.mxu0 %v6093_v39  ;;  %s6110_s16 = scalar_lea.vmem %s5159_s15, 32  ;;  %p6115_p1 = scmp.lt.s32.totalorder %s5159_s15, %s5159_s15 }
 0x1e5   :  { %3705 = vmatprep.mubr.bf16.mxu1 %v6257_v27  ;;  %4945 = vmatprep.mubr.bf16.mxu0 %v1095_v40  ;;  %v1057_v27 = vcombine.high %v7052_v13, %v7052_v13  ;;  %p6111_p0 = scmp.ne.s32.totalorder %s5159_s15, %s6110_s16  ;;  %p6116_p2 = scmp.lt.s32.totalorder %s6110_s16, %s6110_s16 }
 0x1e7   :  { %v1071_v47 = vrot.slane %v1057_v27, %v6229_v12  ;;  %p6117_p3 = por %p6116_p2, %p6115_p1 }
 0x1e9   :  { %v1086_v48 = vrot.slane %v1071_v47, %v6229_v12  ;;  %p6118_p4 = pnand %p6117_p3, %p6111_p0 }
 0x1eb   :  { %3676 = vmatpush1.bf16.xpose.msra.mxu1 %v6088_v41  ;;  %4916 = vmatpush1.bf16.xpose.msra.mxu0 %v6091_v42  ;;  %v5132_v42 = vsub.f32 1.0, %v5086_v35 }
 0x1ec   :  { %5440 = vmatprep.subr.bf16.mxu0 %v6159_v43  ;;  %5448 = vmatprep.subr.mxu1 %v6159_v43 }
 0x1f2   :  { %3706 = vmatmul.mubr.bf16.vlgmr.msra.gmra.mrb[0].mxu1 %v6250_v24  ;;  %4946 = vmatmul.mubr.bf16.vlgmr.msra.gmra.mrb[0].mxu0 %v1094_v44  ;;  %v4993_v24 = vld [vmem:[%s7169_s3] sm:$0xf] }
 0x1f3   :  { %5441 = vmatpush3.bf16.xpose.msra.mxu0 %v6094_v45  ;;  %5444 = vmatprep.mubr.msk.bf16.mxu0 %vm6160_vm0, %v6159_v43 }
 0x1f4   :  { %5442 = vmatprep.subr.bf16.mxu0 %v6159_v43  ;;  %5450 = vmatprep.mubr.msk.f32.mxu1 %vm6160_vm0, %v6159_v43  ;;  %v5087_v43 = vld [vmem:[%s7172_s6] sm:$0x3] }
 0x1f5   :  { %5449 = vmatpush3.xpose.msk.msra.mxu1 %vm5001_vm1, %v4993_v24  ;;  %v5130_v45 = vsub.f32 0.0, %v5087_v43 }
 0x1fb   :  { %5443 = vmatpush3.bf16.xpose.msra.mxu0 %v6095_v46 }
 0x202   :  { %5445 = vmatmul.mubr.bf16.vlgmr.msra.gmra.mrb[0].mxu0 %v1086_v48 }
 0x2c5   :  { %v3707_v49 = vpop.f32.mrb[0].mxu1 }
 0x2c6   :  { %v3709_v50 = vpop.f32.mrb[1].mxu1  ;;  %v5453_v54 = vadd.f32 %v5180_v53, %v3707_v49 }
 0x2c7   :  { %v3710_v51 = vpop.f32.mrb[2].mxu1 }
 0x2c8   :  { %v3711_v52 = vpop.f32.mrb[3].mxu1 }
 0x2d5   :  { %v4987_v55 = vpop.f32.mrb[0].mxu0 }
 0x2d6   :  { %v5454_v56 = vadd.f32 %v5453_v54, %v4987_v55  ;;  %v5446_v57 = vpop.f32.mrb[1].mxu0 }
 0x2d7   :  { %v4990_v12 = vpop.f32.mrb[2].mxu0 }
 0x2d8   :  { %v5447_v58 = vpop.f32.mrb[3].mxu0  ;;  %5451 = vmatmul.mubr.msk.f32.vlgmr.msra.gmra.mrb[4].mxu1 %vm5001_vm1, %v5454_v56 }
 0x3ab   :  { %v5074_v60 = vpop.f32.mrb[4].mxu1 }
 0x3ac   :  { %v5075_v61 = vadd.f32 %v5431_v59, %v5074_v60  ;;  %v5452_v62 = vpop.f32.mrb[5].mxu1 }
 0x3ae   :  { %v5434_v63 = vmul.f32 -1.442695, %v5075_v61  ;;  %v5088_v0 = vsub.f32 0.0, %v5075_v61 }
 0x3b0   :  { %6096 = vpow2.f32 %v5434_v63  ;;  %v5092_v1 = vand.u32 2147483647, %v5088_v0  ;;  %v5109_v2 = vsub.f32 0.0, %v5088_v0  ;;  %v5089_v28 = vmax.f32 %v5088_v0, 0.0 }
 0x3b1   :  { %vm5090_vm5 = vcmp.ne.f32.partialorder %v5088_v0, %v5088_v0 }
 0x3b2   :  { %v5093_v3 = vsub.f32 0.0, %v5092_v1  ;;  %v5113_v4 = vand.u32 2147483647, %v5109_v2  ;;  %v5110_v33 = vmax.f32 %v5109_v2, 0.0  ;;  %vm5111_vm6 = vcmp.ne.f32.partialorder %v5109_v2, %v5109_v2 }
 0x3b4   :  { %v5094_v5 = vmul.f32 1.442695, %v5093_v3  ;;  %v5114_v6 = vsub.f32 0.0, %v5113_v4 }
 0x3b6   :  { %6098 = vpow2.f32 %v5094_v5  ;;  %v5115_v7 = vmul.f32 1.442695, %v5114_v6 }
 0x3b8   :  { %6100 = vpow2.f32 %v5115_v7 }
 0x3ba   :  { %v6097_v8 = vpop.eup %6096 }
 0x3bb   :  { %v5081_v9 = vadd.f32 1.0, %v6097_v8 }
 0x3bd   :  { %6102 = vrcp.f32 %v5081_v9 }
 0x3c0   :  { %v6099_v10 = vpop.eup %6098 }
 0x3c1   :  { %v5096_v11 = vadd.f32 1.0, %v6099_v10  ;;  %v5099_v15 = vmul.f32 -0.5, %v6099_v10  ;;  %v5102_v19 = vand.u32 2147483647, %v6099_v10 }
 0x3c2   :  { %v6101_v13 = vpop.eup %6100 }
 0x3c3   :  { %6104 = vlog2.f32 %v5096_v11  ;;  %v5117_v14 = vadd.f32 1.0, %v6101_v13  ;;  %v5120_v17 = vmul.f32 -0.5, %v6101_v13  ;;  %v5100_v18 = vadd.f32 1.0, %v5099_v15 }
 0x3c4   :  { %v5123_v22 = vand.u32 2147483647, %v6101_v13  ;;  %vm5103_vm3 = vcmp.lt.f32.partialorder %v5102_v19, 0.0004427343 }
 0x3c5   :  { %6106 = vlog2.f32 %v5117_v14  ;;  %v5121_v20 = vadd.f32 1.0, %v5120_v17  ;;  %v5101_v25 = vmul.f32 %v6099_v10, %v5100_v18 }
 0x3c6   :  { %vm5124_vm4 = vcmp.lt.f32.partialorder %v5123_v22, 0.0004427343 }
 0x3c7   :  { %v6103_v16 = vpop.eup %6102  ;;  %v5122_v31 = vmul.f32 %v6101_v13, %v5121_v20 }
 0x3c8   :  { %5085 = vst.msk [vmem:[#allocation2] sm:$0x3] %vm5084_vm2, %v6103_v16 }
 0x3cd   :  { %v6105_v21 = vpop.eup %6104 }
 0x3ce   :  { %v5098_v23 = vmul.f32 0.6931472, %v6105_v21 }
 0x3cf   :  { %v6107_v26 = vpop.eup %6106 }
 0x3d0   :  { %v5104_v29 = vsel %vm5103_vm3, %v5101_v25, %v5098_v23  ;;  %v5119_v30 = vmul.f32 0.6931472, %v6107_v26 }
 0x3d1   :  { %v5105_v32 = vadd.f32 %v5104_v29, %v5089_v28 }
 0x3d2   :  { %v5125_v34 = vsel %vm5124_vm4, %v5122_v31, %v5119_v30 }
 0x3d3   :  { %v5106_v36 = vsel %vm5090_vm5, %v5088_v0, %v5105_v32  ;;  %v5126_v37 = vadd.f32 %v5125_v34, %v5110_v33 }
 0x3d4   :  { %v5107_v38 = vsub.f32 0.0, %v5106_v36 }
 0x3d5   :  { %v5127_v39 = vsel %vm5111_vm6, %v5109_v2, %v5126_v37 }
 0x3d6   :  { %v5108_v40 = vmax.f32 %v5107_v38, -100.0  ;;  %v5128_v41 = vsub.f32 0.0, %v5127_v39 }
 0x3d8   :  { %v5129_v44 = vmax.f32 %v5128_v41, -100.0  ;;  %v5131_v27 = vmul.f32 %v5108_v40, %v5086_v35 }
 0x3da   :  { %v5133_v46 = vmul.f32 %v5132_v42, %v5129_v44 }
 0x3dc   :  { %v5134_v47 = vadd.f32 %v5133_v46, %v5131_v27 }
 0x3de   :  { %v5135_v48 = vmul.f32 %v5134_v47, %v5130_v45 }
 0x3e0   :  { %v5136_v24 = vsel %vm5084_vm2, %v5135_v48, 0.0 }
 0x3e1   :  { %5137 = vadd.xlane.f32.xlu0 %v5136_v24 }
 0x3e2   :  { %6121 = shalt.err (!%p6118_p4)
}
 0x3e3   :  { %s6122_s18 = scalar_lea.hbm %s7173_s7, 32 }
 0x3e4   :  { %p6123_p5 = scmp.ne.s32.totalorder %s7173_s7, %s6122_s18  ;;  %p6126_p6 = scmp.lt.u32.totalorder %s6122_s18, %s7173_s7 }
 0x3e6   :  { %p6128_p7 = pnand %p6126_p6, %p6123_p5 }
 0x3e8   :  { %6131 = shalt.err (!%p6128_p7)
}
 0x3e9   :  { %5161 = dma.vmem_to_hbm [thread:$0]  %s5159_s15, 32, %s7173_s7, [#allocation3]   ;;  %vm5150_vm7 = vcmask 0  }
 0x3ea   :  { %s6162_s24 = smov [#allocation4]  }
 0x3eb   :  { %s5168_s25 = sshll.u32 %s6162_s24, 4  ;;  %s5169_s25 = int_to_ptr.vmem [resolvable:$true] %s5168_s25 }
 0x3ec   :  { %s6132_s28 = scalar_lea.vmem %s5169_s25, 16  ;;  %s6136_s29 = scalar_lea.vmem %s5169_s25, 32 }
 0x3ed   :  { %p6133_p8 = scmp.ne.s32.totalorder %s5169_s25, %s6132_s28  ;;  %p6137_p9 = scmp.lt.s32.totalorder %s5169_s25, %s5169_s25 }
 0x3ee   :  { %p6138_p10 = scmp.lt.s32.totalorder %s6136_s29, %s6132_s28 }
 0x3f0   :  { %p6139_p11 = por %p6138_p10, %p6137_p9 }
 0x3f2   :  { %p6140_p12 = pnand %p6139_p11, %p6133_p8 }
 0x46e   :  { %v5138_v49 = vpop.xlane.xlu0 %5137 }
 0x46f   :  { %v5139_v50 = vrot.slane %v5138_v49, 4 }
 0x471   :  { %v5140_v51 = vadd.f32 %v5139_v50, %v5138_v49 }
 0x473   :  { %v5141_v52 = vrot.slane %v5140_v51, 2 }
 0x475   :  { %v5142_v53 = vadd.f32 %v5141_v52, %v5140_v51 }
 0x477   :  { %v5143_v54 = vrot.slane %v5142_v53, 1 }
 0x479   :  { %v5144_v55 = vadd.f32 %v5143_v54, %v5142_v53 }
 0x47b   :  { %5699 = vpush %v5144_v55 }
 0x4ac   :  { %s5700_s26 = spop %5699 }
 0x4ad   :  { %s5148_s27 = smul.f32 0.125, %s5700_s26 }
 0x4af   :  { %v5149_v56 = vstv %s5148_s27 }
 0x4b0   :  { %5151 = vst.msk [vmem:[#allocation4] sm:$0x1] %vm5150_vm7, %v5149_v56 }
 0x4b1   :  { %6143 = shalt.err (!%p6140_p12)
}
 0x4b2   :  { %s6144_s9 = scalar_lea.hbm %s7174_s8, 16 }
 0x4b3   :  { %p6145_p13 = scmp.ne.s32.totalorder %s7174_s8, %s6144_s9  ;;  %p6148_p0 = scmp.lt.u32.totalorder %s6144_s9, %s7174_s8 }
 0x4b5   :  { %p6150_p1 = pnand %p6148_p0, %p6145_p13 }
 0x4b7   :  { %6153 = shalt.err (!%p6150_p1)
}
 0x4b8   :  { %5171 = dma.vmem_to_hbm [thread:$0]  %s5169_s25, 16, %s7174_s8, [#allocation5]  }
 0x4b9   :  { %6154 = dma.done.wait [#allocation3], 32  }
 0x4ba   :  { %6155 = vsyncadd [#allocation3], 4294967264 }
 0x4bb   :  { %6156 = dma.done.wait [#allocation5], 16  }
 0x4bc   :  { %6157 = vsyncadd [#allocation5], 4294967280 }
 0x4bd   :  { %5178 = vsyncpa [#allocation3], 1 }
 0x4be   :  { %5179 = vsyncpa [#allocation5], 1 }

</bundles_post_ra>
